<compile_context>
chip_gen: v6e
topology: v6e:2x2x1
jax: 0.10.0
libtpu: 0.0.40
codegen_flags: <defaults>
</compile_context>

<pallas_src>
import jax
import jax.numpy as jnp
import numpy as np
from jax.experimental import pallas as pl
from jax.experimental.pallas import tpu as pltpu


def _make_kernel(max_k, oc):
    def kernel(scores_ref,                    # [N, OC] f32 (raw scores `c`)
               feats_ref,                     # [N, F] f32
               w1_ref, b1_ref, w2_ref, b2_ref,  # q-MLP weights (w1/w2 bf16)
               wp_ref, bp_ref,                # proj tile: [F, TF] bf16, [1, TF] f32
               fccw_ref, fccb_ref,            # conv tile [OC*OC, TF] f32, bias [1, OC]
               cout_ref, a_ref, b_ref,        # outputs: [1, OC], [N, max_k], [max_k, TF]
               bpre_ref):                     # scratch [max_k, F] bf16 (A^T V)
        j = pl.program_id(0)

        def qnet(x):
            # Linear(F, D) -> ReLU -> Linear(D, D) -> Tanh; bf16 weights, f32 math.
            w1 = w1_ref[...].astype(jnp.float32)
            h = jnp.dot(x, w1, preferred_element_type=jnp.float32) + b1_ref[...]
            h = jnp.maximum(h, 0.0)
            w2 = w2_ref[...].astype(jnp.float32)
            h = jnp.dot(h, w2, preferred_element_type=jnp.float32) + b2_ref[...]
            return jnp.tanh(h)

        def l2n(x):
            # F.normalize(x, dim=-1, p=2) with eps=1e-12, via rsqrt.
            ss = jnp.sum(x * x, axis=-1, keepdims=True)
            return x * jax.lax.rsqrt(jnp.maximum(ss, 1e-24))

        @pl.when(j == 0)
        def _init():
            n = feats_ref.shape[0]
            feats = feats_ref[...]                       # [N, F]

            H = qnet(feats)                              # [N, D] (q-MLP once for all rows)
            Q = l2n(H)                                   # [N, D]
            V = l2n(feats)                               # [N, F] (self.v = Identity)

            # ---- fused top-max_k selection (greedy; ties -> smallest index) ----
            # TODO(synk): torch.sort(descending=True) leaves tie order
            # unspecified; this only matters if max scores tie exactly.
            m = jnp.max(scores_ref[...], axis=1, keepdims=True)          # [N, 1]
            row_ids = jax.lax.broadcasted_iota(jnp.int32, (n, 1), 0)     # [N, 1]
            col_ids = jax.lax.broadcasted_iota(jnp.int32, (1, n), 1)     # [1, N]
            remaining = m
            sel_rows = []
            for _ in range(max_k):
                cur_max = jnp.max(remaining, keepdims=True)              # [1, 1]
                idx = jnp.min(jnp.where(remaining == cur_max, row_ids, n),
                              keepdims=True)                             # [1, 1] int32
                sel_rows.append((col_ids == idx).astype(jnp.float32))    # [1, N]
                remaining = jnp.where(row_ids == idx, -jnp.inf, remaining)
            sel = jnp.concatenate(sel_rows, axis=0)                      # [K, N] one-hot
            # Exact gather of the selected rows of H (== qnet(feats[idx])) on the MXU.
            q_max = jnp.dot(sel, H, preferred_element_type=jnp.float32)  # [K, D]

            # A = softmax(normalize(Q @ q_max^T), dim=1)   (exact division)
            A = jnp.dot(Q, q_max.T, preferred_element_type=jnp.float32)  # [N, K]
            A = l2n(A)
            A = A - jnp.max(A, axis=-1, keepdims=True)
            A = jnp.exp(A)
            A = A / jnp.sum(A, axis=-1, keepdims=True)
            a_ref[...] = A

            # B_pre = A^T @ V, cast once to bf16, reused by every proj column tile.
            bpre_ref[...] = jnp.dot(A.T, V, preferred_element_type=jnp.float32
                                    ).astype(jnp.bfloat16)               # [K, F]
            cout_ref[...] = jnp.zeros_like(cout_ref)

        # --- per-tile streamed work: B[:, tile] = B_pre @ wp[:, tile] + bp ---
        b_tile = jnp.dot(bpre_ref[...], wp_ref[...],
                         preferred_element_type=jnp.float32) + bp_ref[...]  # [K, TF] f32
        b_ref[...] = b_tile

        # Conv1d(OC, OC, kernel_size=F) over B[1, OC, F] is a full contraction:
        # accumulate this F tile's partial sum, lane-major into the resident
        # (1, OC) output block.  fccw is flattened [o*OC + i, f].
        w_all = fccw_ref[...]                                            # [OC*OC, TF]
        parts = []
        for o in range(oc):
            parts.append(jnp.sum(w_all[o * oc:(o + 1) * oc, :] * b_tile,
                                 keepdims=True))                         # [1, 1]
        cout_ref[...] += jnp.concatenate(parts, axis=1)                  # [1, OC]

        @pl.when(j == pl.num_programs(0) - 1)
        def _fin():
            cout_ref[...] += fccb_ref[...]

    return kernel


def bclassifier_forward(feats, c, params, max_k, tile_f=512):
    N, F = feats.shape
    D = params["w1"].shape[1]
    OC = params["fccw"].shape[0]
    assert F % tile_f == 0 and tile_f % 128 == 0
    # Conv1d(output_class, output_class, kernel_size=F) on B[1, max_k, F]
    # requires max_k == output_class (same implicit requirement as the module).
    assert max_k == OC
    n_tiles = F // tile_f

    # Weights feeding the MXU travel in bf16 (HBM stream halved).  Store them
    # as bf16 in `params` so these casts are no-ops per call; biases,
    # activations and accumulation stay f32.
    wp = params["wp"].astype(jnp.bfloat16)
    w1 = params["w1"].astype(jnp.bfloat16)
    w2 = params["w2"].astype(jnp.bfloat16)
    # Contiguous (free) reshapes: conv weight flattened 2-D, conv bias lane-major.
    fccw = params["fccw"].reshape(OC * OC, F)
    fccb = params["fccb"].reshape(1, OC)

    # With tile_f=512 there are only 2 tiles, so default double buffering
    # already hides the whole wp/fccw stream behind the long j==0 body; only
    # ask for 3-deep buffering when there are >=3 tiles.
    deep = pl.Buffered(3) if n_tiles >= 3 else None

    def spec(shape, imap, pm=None):
        if pm is None:
            return pl.BlockSpec(shape, imap)
        return pl.BlockSpec(shape, imap, pipeline_mode=pm)

    kernel = _make_kernel(max_k, OC)
    grid_spec = pltpu.PrefetchScalarGridSpec(
        num_scalar_prefetch=0,
        grid=(n_tiles,),
        in_specs=[
            pl.BlockSpec((N, OC), lambda j: (0, 0)),          # c (scores, fused top-k)
            pl.BlockSpec((N, F), lambda j: (0, 0)),           # feats
            pl.BlockSpec((F, D), lambda j: (0, 0)),           # w1 (bf16)
            pl.BlockSpec((1, D), lambda j: (0, 0)),           # b1
            pl.BlockSpec((D, D), lambda j: (0, 0)),           # w2 (bf16)
            pl.BlockSpec((1, D), lambda j: (0, 0)),           # b2
            spec((F, tile_f), lambda j: (0, j), deep),        # wp (bf16, streamed)
            pl.BlockSpec((1, tile_f), lambda j: (0, j)),      # bp (streamed)
            spec((OC * OC, tile_f), lambda j: (0, j), deep),  # fccw flat (streamed)
            pl.BlockSpec((1, OC), lambda j: (0, 0)),          # fccb (lane-major)
        ],
        out_specs=(
            pl.BlockSpec((1, OC), lambda j: (0, 0)),          # C (resident accumulator)
            pl.BlockSpec((N, max_k), lambda j: (0, 0)),       # A
            pl.BlockSpec((max_k, tile_f), lambda j: (0, j)),  # B (streamed out)
        ),
        scratch_shapes=[pltpu.VMEM((max_k, F), jnp.bfloat16)],  # B_pre = A^T V (bf16)
    )

    C, A, B = pl.pallas_call(
        kernel,
        out_shape=(
            jax.ShapeDtypeStruct((1, OC), jnp.float32),
            jax.ShapeDtypeStruct((N, max_k), jnp.float32),
            jax.ShapeDtypeStruct((max_k, F), jnp.float32),
        ),
        grid_spec=grid_spec,
        compiler_params=pltpu.CompilerParams(
            dimension_semantics=("arbitrary",),        # C/A resident across tiles
            vmem_limit_bytes=32 * 1024 * 1024,         # real footprint ~5 MiB
        ),
    )(c, feats, w1, params["b1"], w2, params["b2"], wp, params["bp"], fccw, fccb)

    # C is already (1, OC); B gets the leading batch dim (free reshape).
    return C, A, B[None, :, :]


def reference_forward(feats, c, params, max_k):
    """Pure-JAX f32 reference mirroring the PyTorch module."""
    def qnet(x):
        h = jnp.maximum(x @ params["w1"] + params["b1"], 0.0)
        return jnp.tanh(h @ params["w2"] + params["b2"])

    def l2n(x):
        n = jnp.linalg.norm(x, axis=-1, keepdims=True)
        return x / jnp.maximum(n, 1e-12)

    V = l2n(feats)
    Q = l2n(qnet(feats))
    m_values = jnp.max(c, axis=1)
    idx = jnp.argsort(-m_values)[:max_k]
    q_max = qnet(feats[idx])
    A = Q @ q_max.T
    A = jax.nn.softmax(l2n(A), axis=1)
    B = A.T @ V
    B = B @ params["wp"] + params["bp"]
    Cv = jnp.sum(params["fccw"] * B[None], axis=(1, 2)) + params["fccb"][:, 0]
    return Cv.reshape(1, -1), A, B[None]


if __name__ == "__main__":
    # Shapes consistent with the module: proj is hard-wired 1024->1024 so
    # input_size must be 1024; the Conv1d requires max_k == output_class.
    N, F, D, OC, MAX_K = 8, 1024, 128, 2, 2

    key = jax.random.PRNGKey(0)
    keys = jax.random.split(key, 10)
    feats = jax.random.normal(keys[0], (N, F), jnp.float32)
    c_in = jax.random.normal(keys[1], (N, OC), jnp.float32)

    def fan(n):
        return 1.0 / np.sqrt(n)

    w1_f32 = jax.random.normal(keys[2], (F, D), jnp.float32) * fan(F)
    w2_f32 = jax.random.normal(keys[4], (D, D), jnp.float32) * fan(D)
    wp_f32 = jax.random.normal(keys[6], (F, F), jnp.float32) * fan(F)
    params = dict(
        w1=w1_f32.astype(jnp.bfloat16),    # MXU weights stored bf16 (cast once here)
        b1=jax.random.normal(keys[3], (1, D), jnp.float32) * 0.01,
        w2=w2_f32.astype(jnp.bfloat16),
        b2=jax.random.normal(keys[5], (1, D), jnp.float32) * 0.01,
        wp=wp_f32.astype(jnp.bfloat16),
        bp=jax.random.normal(keys[7], (1, F), jnp.float32) * 0.01,
        fccw=jax.random.normal(keys[8], (OC, OC, F), jnp.float32) * fan(OC * F),
        fccb=jax.random.normal(keys[9], (OC, 1), jnp.float32) * 0.01,
    )

    fwd = jax.jit(bclassifier_forward, static_argnums=(3,))
    C, A, B = jax.block_until_ready(fwd(feats, c_in, params, MAX_K))

    # Compare against a full-f32 reference (bf16 w1/w2/wp => relaxed tolerances).
    ref_params = dict(params, wp=wp_f32, w1=w1_f32, w2=w2_f32)
    Cr, Ar, Br = reference_forward(feats, c_in, ref_params, MAX_K)
    np.testing.assert_allclose(np.asarray(A), np.asarray(Ar), rtol=2e-2, atol=1e-2)
    np.testing.assert_allclose(np.asarray(B), np.asarray(Br), rtol=5e-2, atol=1e-2)
    np.testing.assert_allclose(np.asarray(C), np.asarray(Cr), rtol=5e-2, atol=1e-2)

    print("KERNEL_OK")
</pallas_src>

<mosaic_0001>
module attributes {stable_mosaic.version = 11 : i64} {
  func.func @kernel(%arg0: i32, %arg1: memref<8x2xf32, #tpu.memory_space<vmem>>, %arg2: memref<8x1024xf32, #tpu.memory_space<vmem>>, %arg3: memref<1024x128xbf16, #tpu.memory_space<vmem>>, %arg4: memref<1x128xf32, #tpu.memory_space<vmem>>, %arg5: memref<128x128xbf16, #tpu.memory_space<vmem>>, %arg6: memref<1x128xf32, #tpu.memory_space<vmem>>, %arg7: memref<1024x512xbf16, #tpu.memory_space<vmem>>, %arg8: memref<1x512xf32, #tpu.memory_space<vmem>>, %arg9: memref<4x512xf32, #tpu.memory_space<vmem>>, %arg10: memref<1x2xf32, #tpu.memory_space<vmem>>, %arg11: memref<1x2xf32, #tpu.memory_space<vmem>>, %arg12: memref<8x2xf32, #tpu.memory_space<vmem>>, %arg13: memref<2x512xf32, #tpu.memory_space<vmem>>, %arg14: memref<2x1024xbf16, #tpu.memory_space<vmem>>) attributes {dimension_semantics = [#tpu.dimension_semantics<arbitrary>], iteration_bounds = array<i64: 2>, scalar_prefetch = 0 : i64, scratch_operands = 1 : i64, tpu.core_type = #tpu.core_type<tc>, window_params = [{pipeline_mode = #tpu.pipeline_mode<synchronous>, transform_indices = @transform_0, window_bounds = array<i64: 8, 2>}, {pipeline_mode = #tpu.pipeline_mode<synchronous>, transform_indices = @transform_1, window_bounds = array<i64: 8, 1024>}, {pipeline_mode = #tpu.pipeline_mode<synchronous>, transform_indices = @transform_2, window_bounds = array<i64: 1024, 128>}, {pipeline_mode = #tpu.pipeline_mode<synchronous>, transform_indices = @transform_3, window_bounds = array<i64: 1, 128>}, {pipeline_mode = #tpu.pipeline_mode<synchronous>, transform_indices = @transform_4, window_bounds = array<i64: 128, 128>}, {pipeline_mode = #tpu.pipeline_mode<synchronous>, transform_indices = @transform_5, window_bounds = array<i64: 1, 128>}, {transform_indices = @transform_6, window_bounds = array<i64: 1024, 512>}, {transform_indices = @transform_7, window_bounds = array<i64: 1, 512>}, {transform_indices = @transform_8, window_bounds = array<i64: 4, 512>}, {pipeline_mode = #tpu.pipeline_mode<synchronous>, transform_indices = @transform_9, window_bounds = array<i64: 1, 2>}, {pipeline_mode = #tpu.pipeline_mode<synchronous>, transform_indices = @transform_10, window_bounds = array<i64: 1, 2>}, {pipeline_mode = #tpu.pipeline_mode<synchronous>, transform_indices = @transform_11, window_bounds = array<i64: 8, 2>}, {transform_indices = @transform_12, window_bounds = array<i64: 2, 512>}]} {
    %c0_i32 = arith.constant 0 : i32
    %0 = arith.cmpi eq, %arg0, %c0_i32 : i32
    %1 = arith.extui %0 : i1 to i32
    %c0_i32_0 = arith.constant 0 : i32
    %2 = arith.cmpi ne, %1, %c0_i32_0 : i32
    scf.if %2 {
      %c0_17 = arith.constant 0 : index
      %c0_18 = arith.constant 0 : index
      %32 = vector.load %arg2[%c0_17, %c0_18] : memref<8x1024xf32, #tpu.memory_space<vmem>>, vector<8x1024xf32>
      %c0_19 = arith.constant 0 : index
      %c0_20 = arith.constant 0 : index
      %33 = vector.load %arg3[%c0_19, %c0_20] : memref<1024x128xbf16, #tpu.memory_space<vmem>>, vector<1024x128xbf16>
      %34 = arith.extf %33 : vector<1024x128xbf16> to vector<1024x128xf32>
      %cst_21 = arith.constant dense<0.000000e+00> : vector<8x128xf32>
      %35 = tpu.matmul %32, %34, %cst_21 {dimension_numbers = #tpu.dot_dimension_numbers<[1], [0], [0], [1], [0, 0, 1, 1], [], []>} : vector<8x1024xf32>, vector<1024x128xf32>, vector<8x128xf32> -> vector<8x128xf32>
      %c0_22 = arith.constant 0 : index
      %c0_23 = arith.constant 0 : index
      %36 = vector.load %arg4[%c0_22, %c0_23] : memref<1x128xf32, #tpu.memory_space<vmem>>, vector<1x128xf32>
      %37 = vector.broadcast %36 : vector<1x128xf32> to vector<8x128xf32>
      %38 = arith.addf %35, %37 : vector<8x128xf32>
      %cst_24 = arith.constant 0.000000e+00 : f32
      %39 = vector.broadcast %cst_24 : f32 to vector<8x128xf32>
      %40 = arith.maximumf %38, %39 : vector<8x128xf32>
      %c0_25 = arith.constant 0 : index
      %c0_26 = arith.constant 0 : index
      %41 = vector.load %arg5[%c0_25, %c0_26] : memref<128x128xbf16, #tpu.memory_space<vmem>>, vector<128x128xbf16>
      %42 = arith.extf %41 : vector<128x128xbf16> to vector<128x128xf32>
      %cst_27 = arith.constant dense<0.000000e+00> : vector<8x128xf32>
      %43 = tpu.matmul %40, %42, %cst_27 {dimension_numbers = #tpu.dot_dimension_numbers<[1], [0], [0], [1], [0, 0, 1, 1], [], []>} : vector<8x128xf32>, vector<128x128xf32>, vector<8x128xf32> -> vector<8x128xf32>
      %c0_28 = arith.constant 0 : index
      %c0_29 = arith.constant 0 : index
      %44 = vector.load %arg6[%c0_28, %c0_29] : memref<1x128xf32, #tpu.memory_space<vmem>>, vector<1x128xf32>
      %45 = vector.broadcast %44 : vector<1x128xf32> to vector<8x128xf32>
      %46 = arith.addf %43, %45 : vector<8x128xf32>
      %47 = math.tanh %46 : vector<8x128xf32>
      %48 = arith.mulf %47, %47 : vector<8x128xf32>
      %cst_30 = arith.constant dense<0.000000e+00> : vector<8xf32>
      %49 = vector.multi_reduction <add>, %48, %cst_30 [1] : vector<8x128xf32> to vector<8xf32>
      %50 = vector.shape_cast %49 : vector<8xf32> to vector<8x1xf32>
      %cst_31 = arith.constant 1.000000e-24 : f32
      %51 = vector.broadcast %cst_31 : f32 to vector<8x1xf32>
      %52 = arith.maximumf %50, %51 : vector<8x1xf32>
      %53 = math.rsqrt %52 : vector<8x1xf32>
      %54 = vector.broadcast %53 : vector<8x1xf32> to vector<8x128xf32>
      %55 = arith.mulf %47, %54 : vector<8x128xf32>
      %56 = arith.mulf %32, %32 : vector<8x1024xf32>
      %cst_32 = arith.constant dense<0.000000e+00> : vector<8xf32>
      %57 = vector.multi_reduction <add>, %56, %cst_32 [1] : vector<8x1024xf32> to vector<8xf32>
      %58 = vector.shape_cast %57 : vector<8xf32> to vector<8x1xf32>
      %cst_33 = arith.constant 1.000000e-24 : f32
      %59 = vector.broadcast %cst_33 : f32 to vector<8x1xf32>
      %60 = arith.maximumf %58, %59 : vector<8x1xf32>
      %61 = math.rsqrt %60 : vector<8x1xf32>
      %62 = vector.broadcast %61 : vector<8x1xf32> to vector<8x1024xf32>
      %63 = arith.mulf %32, %62 : vector<8x1024xf32>
      %c0_34 = arith.constant 0 : index
      %c0_35 = arith.constant 0 : index
      %64 = vector.load %arg1[%c0_34, %c0_35] : memref<8x2xf32, #tpu.memory_space<vmem>>, vector<8x2xf32>
      %cst_36 = arith.constant dense<0xFF800000> : vector<8xf32>
      %65 = vector.multi_reduction <maximumf>, %64, %cst_36 [1] : vector<8x2xf32> to vector<8xf32>
      %66 = vector.shape_cast %65 : vector<8xf32> to vector<8x1xf32>
      %67 = tpu.iota {dimensions = array<i32: 0>} : vector<8x1xi32>
      %68 = tpu.iota {dimensions = array<i32: 1>} : vector<1x8xi32>
      %69 = vector.shape_cast %66 : vector<8x1xf32> to vector<1x8x1xf32>
      %cst_37 = arith.constant dense<0xFF800000> : vector<1xf32>
      %70 = vector.multi_reduction <maximumf>, %69, %cst_37 [1, 2] : vector<1x8x1xf32> to vector<1xf32>
      %71 = vector.shape_cast %70 : vector<1xf32> to vector<1x1x1xf32>
      %72 = vector.extract %71[0, 0, 0] : f32 from vector<1x1x1xf32>
      %73 = vector.broadcast %72 : f32 to vector<1x1xf32>
      %74 = vector.broadcast %73 : vector<1x1xf32> to vector<8x1xf32>
      %75 = arith.cmpf oeq, %66, %74 : vector<8x1xf32>
      %c8_i32 = arith.constant 8 : i32
      %76 = vector.broadcast %c8_i32 : i32 to vector<8x1xi32>
      %77 = arith.select %75, %67, %76 : vector<8x1xi1>, vector<8x1xi32>
      %78 = vector.shape_cast %77 : vector<8x1xi32> to vector<1x8x1xi32>
      %cst_38 = arith.constant dense<2147483647> : vector<1xi32>
      %79 = vector.multi_reduction <minsi>, %78, %cst_38 [1, 2] : vector<1x8x1xi32> to vector<1xi32>
      %80 = vector.shape_cast %79 : vector<1xi32> to vector<1x1x1xi32>
      %81 = vector.extract %80[0, 0, 0] : i32 from vector<1x1x1xi32>
      %82 = vector.broadcast %81 : i32 to vector<1x1xi32>
      %83 = vector.broadcast %82 : vector<1x1xi32> to vector<1x8xi32>
      %84 = arith.cmpi eq, %68, %83 : vector<1x8xi32>
      %85 = arith.extui %84 : vector<1x8xi1> to vector<1x8xi32>
      %86 = arith.sitofp %85 : vector<1x8xi32> to vector<1x8xf32>
      %87 = vector.broadcast %82 : vector<1x1xi32> to vector<8x1xi32>
      %88 = arith.cmpi eq, %67, %87 : vector<8x1xi32>
      %cst_39 = arith.constant 0xFF800000 : f32
      %89 = vector.broadcast %cst_39 : f32 to vector<8x1xf32>
      %90 = arith.select %88, %89, %66 : vector<8x1xi1>, vector<8x1xf32>
      %91 = vector.shape_cast %90 : vector<8x1xf32> to vector<1x8x1xf32>
      %cst_40 = arith.constant dense<0xFF800000> : vector<1xf32>
      %92 = vector.multi_reduction <maximumf>, %91, %cst_40 [1, 2] : vector<1x8x1xf32> to vector<1xf32>
      %93 = vector.shape_cast %92 : vector<1xf32> to vector<1x1x1xf32>
      %94 = vector.extract %93[0, 0, 0] : f32 from vector<1x1x1xf32>
      %95 = vector.broadcast %94 : f32 to vector<1x1xf32>
      %96 = vector.broadcast %95 : vector<1x1xf32> to vector<8x1xf32>
      %97 = arith.cmpf oeq, %90, %96 : vector<8x1xf32>
      %c8_i32_41 = arith.constant 8 : i32
      %98 = vector.broadcast %c8_i32_41 : i32 to vector<8x1xi32>
      %99 = arith.select %97, %67, %98 : vector<8x1xi1>, vector<8x1xi32>
      %100 = vector.shape_cast %99 : vector<8x1xi32> to vector<1x8x1xi32>
      %cst_42 = arith.constant dense<2147483647> : vector<1xi32>
      %101 = vector.multi_reduction <minsi>, %100, %cst_42 [1, 2] : vector<1x8x1xi32> to vector<1xi32>
      %102 = vector.shape_cast %101 : vector<1xi32> to vector<1x1x1xi32>
      %103 = vector.extract %102[0, 0, 0] : i32 from vector<1x1x1xi32>
      %104 = vector.broadcast %103 : i32 to vector<1x1xi32>
      %105 = vector.broadcast %104 : vector<1x1xi32> to vector<1x8xi32>
      %106 = arith.cmpi eq, %68, %105 : vector<1x8xi32>
      %107 = arith.extui %106 : vector<1x8xi1> to vector<1x8xi32>
      %108 = arith.sitofp %107 : vector<1x8xi32> to vector<1x8xf32>
      %109 = tpu.concatenate %86, %108 in 0 : vector<1x8xf32>, vector<1x8xf32> -> vector<2x8xf32>
      %cst_43 = arith.constant dense<0.000000e+00> : vector<2x128xf32>
      %110 = tpu.matmul %109, %47, %cst_43 {dimension_numbers = #tpu.dot_dimension_numbers<[1], [0], [0], [1], [0, 0, 1, 1], [], []>} : vector<2x8xf32>, vector<8x128xf32>, vector<2x128xf32> -> vector<2x128xf32>
      %111 = tpu.transpose %110, [1, 0] : vector<2x128xf32> -> vector<128x2xf32>
      %cst_44 = arith.constant dense<0.000000e+00> : vector<8x2xf32>
      %112 = tpu.matmul %55, %111, %cst_44 {dimension_numbers = #tpu.dot_dimension_numbers<[1], [0], [0], [1], [0, 0, 1, 1], [], []>} : vector<8x128xf32>, vector<128x2xf32>, vector<8x2xf32> -> vector<8x2xf32>
      %113 = arith.mulf %112, %112 : vector<8x2xf32>
      %cst_45 = arith.constant dense<0.000000e+00> : vector<8xf32>
      %114 = vector.multi_reduction <add>, %113, %cst_45 [1] : vector<8x2xf32> to vector<8xf32>
      %115 = vector.shape_cast %114 : vector<8xf32> to vector<8x1xf32>
      %cst_46 = arith.constant 1.000000e-24 : f32
      %116 = vector.broadcast %cst_46 : f32 to vector<8x1xf32>
      %117 = arith.maximumf %115, %116 : vector<8x1xf32>
      %118 = math.rsqrt %117 : vector<8x1xf32>
      %119 = vector.broadcast %118 : vector<8x1xf32> to vector<8x2xf32>
      %120 = arith.mulf %112, %119 : vector<8x2xf32>
      %cst_47 = arith.constant dense<0xFF800000> : vector<8xf32>
      %121 = vector.multi_reduction <maximumf>, %120, %cst_47 [1] : vector<8x2xf32> to vector<8xf32>
      %122 = vector.shape_cast %121 : vector<8xf32> to vector<8x1xf32>
      %123 = vector.broadcast %122 : vector<8x1xf32> to vector<8x2xf32>
      %124 = arith.subf %120, %123 : vector<8x2xf32>
      %125 = math.exp %124 : vector<8x2xf32>
      %cst_48 = arith.constant dense<0.000000e+00> : vector<8xf32>
      %126 = vector.multi_reduction <add>, %125, %cst_48 [1] : vector<8x2xf32> to vector<8xf32>
      %127 = vector.shape_cast %126 : vector<8xf32> to vector<8x1xf32>
      %128 = vector.broadcast %127 : vector<8x1xf32> to vector<8x2xf32>
      %129 = arith.divf %125, %128 : vector<8x2xf32>
      %c0_49 = arith.constant 0 : index
      %c0_50 = arith.constant 0 : index
      %130 = vector.load %arg12[%c0_49, %c0_50] : memref<8x2xf32, #tpu.memory_space<vmem>>, vector<8x2xf32>
      tpu.vector_store %arg12[%c0_49, %c0_50], %129 {strides = array<i32>} : memref<8x2xf32, #tpu.memory_space<vmem>>, vector<8x2xf32>,
      %131 = tpu.transpose %129, [1, 0] : vector<8x2xf32> -> vector<2x8xf32>
      %cst_51 = arith.constant dense<0.000000e+00> : vector<2x1024xf32>
      %132 = tpu.matmul %131, %63, %cst_51 {dimension_numbers = #tpu.dot_dimension_numbers<[1], [0], [0], [1], [0, 0, 1, 1], [], []>} : vector<2x8xf32>, vector<8x1024xf32>, vector<2x1024xf32> -> vector<2x1024xf32>
      %133 = arith.truncf %132 : vector<2x1024xf32> to vector<2x1024xbf16>
      %c0_52 = arith.constant 0 : index
      %c0_53 = arith.constant 0 : index
      %134 = vector.load %arg14[%c0_52, %c0_53] : memref<2x1024xbf16, #tpu.memory_space<vmem>>, vector<2x1024xbf16>
      tpu.vector_store %arg14[%c0_52, %c0_53], %133 {strides = array<i32>} : memref<2x1024xbf16, #tpu.memory_space<vmem>>, vector<2x1024xbf16>,
      %cst_54 = arith.constant 0.000000e+00 : f32
      %135 = vector.broadcast %cst_54 : f32 to vector<1x2xf32>
      %c0_55 = arith.constant 0 : index
      %c0_56 = arith.constant 0 : index
      %136 = vector.load %arg11[%c0_55, %c0_56] : memref<1x2xf32, #tpu.memory_space<vmem>>, vector<1x2xf32>
      tpu.vector_store %arg11[%c0_55, %c0_56], %135 {strides = array<i32>} : memref<1x2xf32, #tpu.memory_space<vmem>>, vector<1x2xf32>,
    } else {
    }
    %c0 = arith.constant 0 : index
    %c0_1 = arith.constant 0 : index
    %3 = vector.load %arg14[%c0, %c0_1] : memref<2x1024xbf16, #tpu.memory_space<vmem>>, vector<2x1024xbf16>
    %c0_2 = arith.constant 0 : index
    %c0_3 = arith.constant 0 : index
    %4 = vector.load %arg7[%c0_2, %c0_3] : memref<1024x512xbf16, #tpu.memory_space<vmem>>, vector<1024x512xbf16>
    %cst = arith.constant dense<0.000000e+00> : vector<2x512xf32>
    %5 = tpu.matmul %3, %4, %cst {dimension_numbers = #tpu.dot_dimension_numbers<[1], [0], [0], [1], [0, 0, 1, 1], [], []>} : vector<2x1024xbf16>, vector<1024x512xbf16>, vector<2x512xf32> -> vector<2x512xf32>
    %c0_4 = arith.constant 0 : index
    %c0_5 = arith.constant 0 : index
    %6 = vector.load %arg8[%c0_4, %c0_5] : memref<1x512xf32, #tpu.memory_space<vmem>>, vector<1x512xf32>
    %7 = vector.broadcast %6 : vector<1x512xf32> to vector<2x512xf32>
    %8 = arith.addf %5, %7 : vector<2x512xf32>
    %c0_6 = arith.constant 0 : index
    %c0_7 = arith.constant 0 : index
    %9 = vector.load %arg13[%c0_6, %c0_7] : memref<2x512xf32, #tpu.memory_space<vmem>>, vector<2x512xf32>
    tpu.vector_store %arg13[%c0_6, %c0_7], %8 {strides = array<i32>} : memref<2x512xf32, #tpu.memory_space<vmem>>, vector<2x512xf32>,
    %c0_8 = arith.constant 0 : index
    %c0_9 = arith.constant 0 : index
    %10 = vector.load %arg9[%c0_8, %c0_9] : memref<4x512xf32, #tpu.memory_space<vmem>>, vector<4x512xf32>
    %11 = vector.extract_strided_slice %10 {offsets = [0, 0], sizes = [2, 512], strides = [1, 1]} : vector<4x512xf32> to vector<2x512xf32>
    %12 = arith.mulf %11, %8 : vector<2x512xf32>
    %13 = vector.shape_cast %12 : vector<2x512xf32> to vector<1x2x512xf32>
    %cst_10 = arith.constant dense<0.000000e+00> : vector<1xf32>
    %14 = vector.multi_reduction <add>, %13, %cst_10 [1, 2] : vector<1x2x512xf32> to vector<1xf32>
    %15 = vector.shape_cast %14 : vector<1xf32> to vector<1x1x1xf32>
    %16 = vector.extract %15[0, 0, 0] : f32 from vector<1x1x1xf32>
    %17 = vector.broadcast %16 : f32 to vector<1x1xf32>
    %18 = vector.extract_strided_slice %10 {offsets = [2, 0], sizes = [2, 512], strides = [1, 1]} : vector<4x512xf32> to vector<2x512xf32>
    %19 = arith.mulf %18, %8 : vector<2x512xf32>
    %20 = vector.shape_cast %19 : vector<2x512xf32> to vector<1x2x512xf32>
    %cst_11 = arith.constant dense<0.000000e+00> : vector<1xf32>
    %21 = vector.multi_reduction <add>, %20, %cst_11 [1, 2] : vector<1x2x512xf32> to vector<1xf32>
    %22 = vector.shape_cast %21 : vector<1xf32> to vector<1x1x1xf32>
    %23 = vector.extract %22[0, 0, 0] : f32 from vector<1x1x1xf32>
    %24 = vector.broadcast %23 : f32 to vector<1x1xf32>
    %c0_12 = arith.constant 0 : index
    %c0_13 = arith.constant 0 : index
    %25 = vector.load %arg11[%c0_12, %c0_13] : memref<1x2xf32, #tpu.memory_space<vmem>>, vector<1x2xf32>
    %26 = tpu.concatenate %17, %24 in 1 : vector<1x1xf32>, vector<1x1xf32> -> vector<1x2xf32>
    %27 = arith.addf %25, %26 : vector<1x2xf32>
    %c0_14 = arith.constant 0 : index
    %c0_15 = arith.constant 0 : index
    %28 = vector.load %arg11[%c0_14, %c0_15] : memref<1x2xf32, #tpu.memory_space<vmem>>, vector<1x2xf32>
    tpu.vector_store %arg11[%c0_14, %c0_15], %27 {strides = array<i32>} : memref<1x2xf32, #tpu.memory_space<vmem>>, vector<1x2xf32>,
    %c1_i32 = arith.constant 1 : i32
    %29 = arith.cmpi eq, %arg0, %c1_i32 : i32
    %30 = arith.extui %29 : i1 to i32
    %c0_i32_16 = arith.constant 0 : i32
    %31 = arith.cmpi ne, %30, %c0_i32_16 : i32
    scf.if %31 {
      %c0_17 = arith.constant 0 : index
      %c0_18 = arith.constant 0 : index
      %32 = vector.load %arg11[%c0_17, %c0_18] : memref<1x2xf32, #tpu.memory_space<vmem>>, vector<1x2xf32>
      %c0_19 = arith.constant 0 : index
      %c0_20 = arith.constant 0 : index
      %33 = vector.load %arg10[%c0_19, %c0_20] : memref<1x2xf32, #tpu.memory_space<vmem>>, vector<1x2xf32>
      %34 = arith.addf %32, %33 : vector<1x2xf32>
      %c0_21 = arith.constant 0 : index
      %c0_22 = arith.constant 0 : index
      %35 = vector.load %arg11[%c0_21, %c0_22] : memref<1x2xf32, #tpu.memory_space<vmem>>, vector<1x2xf32>
      tpu.vector_store %arg11[%c0_21, %c0_22], %34 {strides = array<i32>} : memref<1x2xf32, #tpu.memory_space<vmem>>, vector<1x2xf32>,
    } else {
    }
    return
  }
  func.func @transform_0(%arg0: i32) -> (i32, i32) {
    %c0_i32 = arith.constant 0 : i32
    %c0_i32_0 = arith.constant 0 : i32
    %c0_i32_1 = arith.constant 0 : i32
    return %c0_i32, %c0_i32_0 : i32, i32
  }
  func.func @transform_1(%arg0: i32) -> (i32, i32) {
    %c0_i32 = arith.constant 0 : i32
    %c0_i32_0 = arith.constant 0 : i32
    %c0_i32_1 = arith.constant 0 : i32
    return %c0_i32, %c0_i32_0 : i32, i32
  }
  func.func @transform_2(%arg0: i32) -> (i32, i32) {
    %c0_i32 = arith.constant 0 : i32
    %c0_i32_0 = arith.constant 0 : i32
    %c0_i32_1 = arith.constant 0 : i32
    return %c0_i32, %c0_i32_0 : i32, i32
  }
  func.func @transform_3(%arg0: i32) -> (i32, i32) {
    %c0_i32 = arith.constant 0 : i32
    %c0_i32_0 = arith.constant 0 : i32
    %c0_i32_1 = arith.constant 0 : i32
    return %c0_i32, %c0_i32_0 : i32, i32
  }
  func.func @transform_4(%arg0: i32) -> (i32, i32) {
    %c0_i32 = arith.constant 0 : i32
    %c0_i32_0 = arith.constant 0 : i32
    %c0_i32_1 = arith.constant 0 : i32
    return %c0_i32, %c0_i32_0 : i32, i32
  }
  func.func @transform_5(%arg0: i32) -> (i32, i32) {
    %c0_i32 = arith.constant 0 : i32
    %c0_i32_0 = arith.constant 0 : i32
    %c0_i32_1 = arith.constant 0 : i32
    return %c0_i32, %c0_i32_0 : i32, i32
  }
  func.func @transform_6(%arg0: i32) -> (i32, i32) {
    %c0_i32 = arith.constant 0 : i32
    %c0_i32_0 = arith.constant 0 : i32
    return %c0_i32, %arg0 : i32, i32
  }
  func.func @transform_7(%arg0: i32) -> (i32, i32) {
    %c0_i32 = arith.constant 0 : i32
    %c0_i32_0 = arith.constant 0 : i32
    return %c0_i32, %arg0 : i32, i32
  }
  func.func @transform_8(%arg0: i32) -> (i32, i32) {
    %c0_i32 = arith.constant 0 : i32
    %c0_i32_0 = arith.constant 0 : i32
    return %c0_i32, %arg0 : i32, i32
  }
  func.func @transform_9(%arg0: i32) -> (i32, i32) {
    %c0_i32 = arith.constant 0 : i32
    %c0_i32_0 = arith.constant 0 : i32
    %c0_i32_1 = arith.constant 0 : i32
    return %c0_i32, %c0_i32_0 : i32, i32
  }
  func.func @transform_10(%arg0: i32) -> (i32, i32) {
    %c0_i32 = arith.constant 0 : i32
    %c0_i32_0 = arith.constant 0 : i32
    %c0_i32_1 = arith.constant 0 : i32
    return %c0_i32, %c0_i32_0 : i32, i32
  }
  func.func @transform_11(%arg0: i32) -> (i32, i32) {
    %c0_i32 = arith.constant 0 : i32
    %c0_i32_0 = arith.constant 0 : i32
    %c0_i32_1 = arith.constant 0 : i32
    return %c0_i32, %c0_i32_0 : i32, i32
  }
  func.func @transform_12(%arg0: i32) -> (i32, i32) {
    %c0_i32 = arith.constant 0 : i32
    %c0_i32_0 = arith.constant 0 : i32
    return %c0_i32, %arg0 : i32, i32
  }
}

</mosaic_0001>

<bundles_post_ra>
// kernel: bclassifier_forward.1
= control target key start
LH: loop header
LB: loop body
LE: loop exit
PB: predicated region body
PF: predicated region fallthrough
CT: control target
= control target key end

     0   :  { %s6660_s0 = inlined_call_operand.vmem [shape: f32[8,2], index: 0, kind: input, shape index: {}]   ;;  %s6661_s1 = inlined_call_operand.hbm [shape: f32[8,1024], index: 1, kind: input, shape index: {}]   ;;  %s6662_s2 = inlined_call_operand.hbm [shape: bf16[1024,128], index: 2, kind: input, shape index: {}]   ;;  %s6663_s3 = inlined_call_operand.hbm [shape: f32[1,128], index: 3, kind: input, shape index: {}]   ;;  %s6664_s4 = inlined_call_operand.hbm [shape: bf16[128,128], index: 4, kind: input, shape index: {}]   ;;  %s6665_s5 = inlined_call_operand.hbm [shape: f32[1,128], index: 5, kind: input, shape index: {}]   ;;  %s6666_s6 = inlined_call_operand.hbm [shape: bf16[1024,1024], index: 6, kind: input, shape index: {}]   ;;  %s6667_s7 = inlined_call_operand.hbm [shape: f32[1,1024], index: 7, kind: input, shape index: {}]   ;;  %s6668_s8 = inlined_call_operand.vmem [shape: f32[4,1024], index: 8, kind: input, shape index: {}]   ;;  %s6669_s9 = inlined_call_operand.hbm [shape: f32[1,2], index: 9, kind: input, shape index: {}]   ;;  %s6670_s10 = inlined_call_operand.hbm [shape: f32[1,2], index: 10, kind: output, shape index: {0}]   ;;  %s6671_s11 = inlined_call_operand.vmem [shape: f32[8,2], index: 11, kind: output, shape index: {1}]   ;;  %s6672_s12 = inlined_call_operand.hbm [shape: f32[2,1024], index: 12, kind: output, shape index: {2}]  }
   0x1   :  { %6688 = sst [smem:[#allocation32_spill]] %s6662_s2 }
   0x2   :  { %6689 = sst [smem:[#allocation33_spill]] %s6664_s4 }
   0x3   :  { %6690 = sst [smem:[#allocation34_spill]] %s6666_s6 }
   0x4   :  { %6691 = sst [smem:[#allocation35_spill]] %s6670_s10 }
   0x5   :  { %18 = vsyncpa [#allocation4], 0 }
   0x6   :  { %19 = vsyncpa [#allocation7], 0 }
   0x7   :  { %20 = vsyncpa [#allocation10], 0 }
   0x8   :  { %21 = vsyncpa [#allocation13], 0 }
   0x9   :  { %23 = vsyncpa [#allocation13 + $0x1], 0 }
   0xa   :  { %24 = vsyncpa [#allocation16], 0 }
   0xb   :  { %25 = vsyncpa [#allocation5], 0 }
   0xc   :  { %26 = vsyncpa [#allocation19], 0 }
   0xd   :  { %28 = vsyncpa [#allocation19 + $0x1], 0  ;;  %s5950_s21 = smov 0   ;;  %s5952_s22 = smov 0  }
   0xe   :  { %s5954_s23 = smov 0   ;;  %s5956_s24 = smov 0  }
   0xf LB: > { %6692 = sst [smem:[#allocation27_spill]] %s5851_s21  ;;  %s5865_s25 = smov [#allocation6]   ;;  %s5863_s24 = sphi %s5956_s24, %s6735_s24   ;;  %s5859_s23 = sphi %s5954_s23, %s6739_s23   ;;  %s5855_s22 = sphi %s5952_s22, %s6738_s22   ;;  %s5851_s21 = sphi %s5950_s21, %s6737_s21  }
  0x10   : > { %s358_s26 = sshll.u32 %s5865_s25, 4  ;;  %s5971_s27 = sadd.s32 4294967295, %s5863_s24   ;;  %s359_s26 = int_to_ptr.vmem [resolvable:$true] %s358_s26 }
  0x11   : > { %p4134_p0 = scmp.ge.s32.totalorder %s5863_s24, 1  ;;  %p6673_p1 = scmp.eq.s32.totalorder %s5971_s27, 0 }
  0x12   : > { %p332_p2 = scmp.lt.s32.totalorder %s5863_s24, 3  ;;  %s5866_s29 = smov [#allocation9]  }
  0x13   : > { %s382_s30 = sshll.u32 %s5866_s29, 4  ;;  %s5554_s15 = scalar_lea.vmem %s359_s26, 8192  ;;  %s383_s30 = int_to_ptr.vmem [resolvable:$true] %s382_s30 }
  0x14   : > { %p5977_p4 = pnand %p4134_p0, %p332_p2  ;;  %p5555_p9 = scmp.ne.s32.totalorder %s359_s26, %s5554_s15 }
  0x15   : > { %p5562_p12 = scmp.lt.s32.totalorder %s359_s26, %s359_s26  ;;  %p5563_p13 = scmp.lt.s32.totalorder %s5554_s15, %s5554_s15 }
  0x16   : > { %s6693_s28 = scalar_select %p5977_p4, 1, 0 }
  0x17   : > { %p5051_p6 = pneg %p5977_p4  ;;  %p5564_p0 = por %p5563_p13, %p5562_p12 }
  0x19   : > { %p5986_p7 = pnand %p5051_p6, %p6673_p1 }
  0x1b   : > { %s6694_s13 = scalar_select %p5986_p7, 1, 0 }
  0x1c   : > { %p5992_p8 = pneg %p5986_p7 }
  0x1e   : > { %p5557_p10 = pnand %p5555_p9, %p5992_p8 }
  0x20   : > { %p5558_p11 = pneg %p5557_p10 }
  0x22   : > { %p5565_p2 = pnand %p5564_p0, %p5558_p11 }
  0x24   : > { %5568 = shalt.err (!%p5565_p2)
}
  0x25   : > { %s5867_s16 = smov 64   ;;  %s5868_s17 = smov 4  }
  0x26   : > { %s6696_s2 = sld [smem:[#allocation32_spill]]  ;;  %s5580_s20 = scalar_lea.vmem %s383_s30, 1024 }
  0x27   : > { %p5581_p6 = scmp.ne.s32.totalorder %s383_s30, %s5580_s20  ;;  %p5588_p10 = scmp.lt.s32.totalorder %s383_s30, %s383_s30 }
  0x28   : > { %p5589_p3 = scmp.lt.s32.totalorder %s5580_s20, %s5580_s20 }
  0x29   : > { %p5583_p5 = pnand %p5581_p6, %p5992_p8 }
  0x2a   : > { %p5590_p1 = por %p5589_p3, %p5588_p10 }
  0x2b   : > { %p5584_p9 = pneg %p5583_p5 }
  0x2c   : > { %5057 = dma.hbm_to_vmem [thread:$0]  (!%p5986_p7), %s6696_s2, 8192, %s359_s26, [#allocation7], %s5867_s16, %s5867_s16, %s5868_s17  }
  0x2d   : > { %p5591_p12 = pnand %p5590_p1, %p5584_p9 }
  0x2f   : > { %5594 = shalt.err (!%p5591_p12)
}
  0x30   : > { %s6697_s4 = sld [smem:[#allocation33_spill]]  ;;  %s4133_s26 = sadd.s32 4294967294, %s5863_s24  }
  0x31   : > { %s6012_s15 = sadd.s32 1, %s5863_s24   ;;  %s167_s19 = sadd.s32 1, %s5859_s23 }
  0x32   : > { %6698 = sst [smem:[#allocation28_spill]] %s6012_s15  ;;  %s164_s18 = ssub.s32 %s5863_s24, %s6012_s15 }
  0x33   : > { %p165_p1 = scmp.eq.s32.totalorder %s164_s18, 0  ;;  %p174_p3 = scmp.ne.s32.totalorder %s5859_s23, %s5855_s22 }
  0x34   : > { %p175_p5 = scmp.eq.s32.totalorder %s5863_s24, 0  ;;  %p180_p11 = scmp.ne.s32.totalorder %s5855_s22, %s5851_s21 }
  0x35   : > { %s6023_s20 = scalar_select %p165_p1, %s5859_s23, %s167_s19  }
  0x36   : > { %5063 = dma.hbm_to_vmem [thread:$0]  (!%p5986_p7), %s6697_s4, 1024, %s383_s30, [#allocation10], %s5867_s16, %s5867_s16, %s5868_s17  }
  0x37   : > { %6699 = sst [smem:[#allocation29_spill]] %s6023_s20  ;;  %p6025_p13 = por %p175_p5, %p174_p3 }
  0x38   : > { %p6701_p0 = scmp.eq.s32.totalorder %s5971_s27, 0  ;;  %p6681_p6 = scmp.eq.s32.totalorder %s5971_s27, 1 }
  0x39   : > { %p325_p9 = scmp.eq.s32.totalorder %s4133_s26, 1  ;;  %p5087_p10 = scmp.lt.s32.totalorder %s5863_s24, 2 }
  0x3a   : > { %p6031_p2 = por %p6701_p0, %p180_p11  ;;  %s418_s16 = sand.u32 1, %s5863_s24  }
  0x3b   : > { %p6040_p12 = por %p6681_p6, %p174_p3  ;;  %p6044_p1 = por %p325_p9, %p180_p11 }
  0x3c   : > { %s6702_s30 = scalar_select %p6031_p2, 1, 0 }
  0x3d   : > { %s6703_s17 = scalar_select %p6040_p12, 1, 0 }
  0x3e   : > { %s6705_s29 = scalar_select %p6044_p1, 1, 0 }
  0x3f   : > { %6704 = sst [smem:[#allocation30_spill]] %s6703_s17  ;;  %s6679_s18 = sand.u32 1, %s5859_s23  }
  0x40   : > { %6706 = sst [smem:[#allocation31_spill]] %s6705_s29  ;;  %s4142_s19 = sshll.u32 %s6679_s18, 11 }
  0x41   : > { %s4438_s2 = sshll.u32 %s5863_s24, 8  ;;  %s6707_s6 = sld [smem:[#allocation34_spill]] }
  0x42   : > { %s422_s26 = scalar_lea.vmem [#allocation12], %s4142_s19  ;;  %p6059_p3 = pnand %p5087_p10, %p6025_p13 }
  0x43   : > { %s429_s21 = sshll.u32 %s422_s26, 4  ;;  %s6065_s18 = scalar_lea.sflag [#allocation13], %s418_s16  ;;  %s6063_s21 = int_to_ptr.vmem [resolvable:$true] %s429_s21 }
  0x44   : > { %p6687_p11 = pneg %p6059_p3 }
  0x47   : > { %s6055_s15 = scalar_lea.hbm %s6707_s6, %s4438_s2  ;;  %s5600_s20 = scalar_lea.hbm %s6707_s6, 65536 }
  0x48   : > { %s5595_s29 = scalar_lea.hbm %s6055_s15, 32768  ;;  %p5601_p13 = scmp.lt.s32.totalorder %s6055_s15, %s6707_s6 }
  0x49   : > { %p5596_p5 = scmp.ne.s32.totalorder %s6055_s15, %s5595_s29  ;;  %p5602_p10 = scmp.lt.s32.totalorder %s5600_s20, %s5595_s29 }
  0x4b   : > { %p5598_p0 = pnand %p6687_p11, %p5596_p5  ;;  %p5603_p6 = por %p5602_p10, %p5601_p13 }
  0x4d   : > { %p5599_p9 = pneg %p5598_p0 }
  0x4f   : > { %p5604_p1 = pnand %p5603_p6, %p5599_p9 }
  0x51   : > { %5607 = shalt.err (!%p5604_p1)
}
  0x52   : > { %s5608_s16 = scalar_lea.vmem %s6063_s21, 32768  ;;  %s5869_s26 = smov [#allocation12]  }
  0x53   : > { %p5609_p12 = scmp.ne.s32.totalorder %s6063_s21, %s5608_s16  ;;  %s5613_s2 = sshll.u32 %s5869_s26, 4  ;;  %s5614_s2 = int_to_ptr.vmem [resolvable:$false] %s5613_s2 }
  0x54   : > { %s5615_s4 = scalar_lea.vmem %s5614_s2, 65536  ;;  %p5616_p2 = scmp.lt.s32.totalorder %s6063_s21, %s5614_s2 }
  0x55   : > { %p5611_p5 = pnand %p5609_p12, %p6687_p11  ;;  %p5617_p4 = scmp.lt.s32.totalorder %s5615_s4, %s5608_s16 }
  0x57   : > { %p5612_p0 = pneg %p5611_p5  ;;  %p5618_p7 = por %p5617_p4, %p5616_p2 }
  0x59   : > { %p5619_p13 = pnand %p5618_p7, %p5612_p0 }
  0x5b   : > { %5622 = shalt.err (!%p5619_p13)
}
  0x5c   : > { %s5870_s29 = smov 512   ;;  %s5871_s20 = smov 256  }
  0x5d   : > { %s5872_s25 = smov 16   ;;  %s5873_s19 = smov [#allocation3]  }
  0x5e   : > { %5073 = dma.hbm_to_vmem [thread:$0]  (!%p6059_p3), %s6055_s15, 32768, %s6063_s21, %s6065_s18, %s5870_s29, %s5871_s20, %s5872_s25  }
  0x5f   : > { %s348_s6 = sshll.u32 %s5873_s19, 4  ;;  %s5874_s26 = smov [#allocation8]   ;;  %s349_s6 = int_to_ptr.vmem [resolvable:$true] %s348_s6 }
  0x60   : > { %s372_s10 = sshll.u32 %s5874_s26, 4  ;;  %s5634_s2 = scalar_lea.vmem %s349_s6, 1024  ;;  %s373_s10 = int_to_ptr.vmem [resolvable:$true] %s372_s10 }
  0x61   : > { %p5635_p6 = scmp.ne.s32.totalorder %s349_s6, %s5634_s2  ;;  %p5642_p2 = scmp.lt.s32.totalorder %s349_s6, %s349_s6 }
  0x62   : > { %p5643_p12 = scmp.lt.s32.totalorder %s5634_s2, %s5634_s2 }
  0x63   : > { %p5637_p4 = pnand %p5635_p6, %p5992_p8 }
  0x64   : > { %p5644_p1 = por %p5643_p12, %p5642_p2 }
  0x65   : > { %p5638_p7 = pneg %p5637_p4 }
  0x67   : > { %p5645_p9 = pnand %p5644_p1, %p5638_p7 }
  0x69   : > { %5648 = shalt.err (!%p5645_p9)
}
  0x6a   : > { %p6709_p10 = scmp.ne.s32.totalorder %s6694_s13, 0  ;;  %s5660_s21 = scalar_lea.vmem %s373_s10, 16 }
  0x6b   : > { %p5661_p5 = scmp.ne.s32.totalorder %s373_s10, %s5660_s21  ;;  %s5667_s15 = scalar_lea.vmem %s373_s10, 32 }
  0x6c   : > { %5054 = dma.hbm_to_vmem [thread:$0]  (!%p6709_p10), %s6661_s1, 1024, %s349_s6, [#allocation4]  }
  0x6d   : > { %p5663_p0 = pnand %p5661_p5, %p5992_p8  ;;  %p5668_p6 = scmp.lt.s32.totalorder %s373_s10, %s373_s10 }
  0x6e   : > { %p5669_p4 = scmp.lt.s32.totalorder %s5667_s15, %s5660_s21 }
  0x6f   : > { %p5664_p13 = pneg %p5663_p0 }
  0x70   : > { %p5670_p11 = por %p5669_p4, %p5668_p6 }
  0x72   : > { %p5671_p2 = pnand %p5670_p11, %p5664_p13 }
  0x74   : > { %5674 = shalt.err (!%p5671_p2)
}
  0x75   : > { %5060 = dma.hbm_to_vmem [thread:$0]  (!%p6709_p10), %s6663_s3, 16, %s373_s10, [#allocation7]  }
  0x76   : > { %s5875_s6 = smov [#allocation11]   ;;  %s5876_s19 = smov [#allocation15]  }
  0x77   : > { %s396_s25 = sshll.u32 %s5875_s6, 4  ;;  %s407_s26 = sshll.u32 %s5876_s19, 4  ;;  %s397_s25 = int_to_ptr.vmem [resolvable:$true] %s396_s25  ;;  %s408_s26 = int_to_ptr.vmem [resolvable:$true] %s407_s26 }
  0x78   : > { %s5686_s2 = scalar_lea.vmem %s397_s25, 16  ;;  %s5693_s16 = scalar_lea.vmem %s397_s25, 32 }
  0x79   : > { %p5687_p7 = scmp.ne.s32.totalorder %s397_s25, %s5686_s2  ;;  %p5694_p11 = scmp.lt.s32.totalorder %s397_s25, %s397_s25 }
  0x7a   : > { %p5695_p9 = scmp.lt.s32.totalorder %s5693_s16, %s5686_s2 }
  0x7b   : > { %p5689_p12 = pnand %p5687_p7, %p5992_p8 }
  0x7c   : > { %p5696_p5 = por %p5695_p9, %p5694_p11 }
  0x7d   : > { %p5690_p1 = pneg %p5689_p12 }
  0x7f   : > { %p5697_p0 = pnand %p5696_p5, %p5690_p1 }
  0x81   : > { %5700 = shalt.err (!%p5697_p0)
}
  0x82   : > { %5066 = dma.hbm_to_vmem [thread:$0]  (!%p6709_p10), %s6665_s5, 16, %s397_s25, [#allocation10]  }
  0x83   : > { %s6710_s21 = sand.u32 1, %s5859_s23   ;;  %s5712_s29 = scalar_lea.vmem %s408_s26, 16 }
  0x84   : > { %s4145_s15 = sshll.u32 %s6710_s21, 2  ;;  %p5713_p13 = scmp.ne.s32.totalorder %s408_s26, %s5712_s29 }
  0x85   : > { %s5719_s20 = scalar_lea.vmem %s408_s26, 32  ;;  %p5720_p2 = scmp.lt.s32.totalorder %s408_s26, %s408_s26 }
  0x86   : > { %p5715_p6 = pnand %p5713_p13, %p5992_p8  ;;  %p5721_p7 = scmp.lt.s32.totalorder %s5719_s20, %s5712_s29 }
  0x88   : > { %p5716_p4 = pneg %p5715_p6  ;;  %p5722_p12 = por %p5721_p7, %p5720_p2 }
  0x8a   : > { %p5723_p1 = pnand %p5722_p12, %p5716_p4 }
  0x8c   : > { %5726 = shalt.err (!%p5723_p1)
}
  0x8d   : > { %5069 = dma.hbm_to_vmem [thread:$0]  (!%p6709_p10), %s6669_s9, 16, %s408_s26, [#allocation16]  }
  0x8e   : > { %s4439_s25 = sshll.u32 %s5863_s24, 6  ;;  %s443_s4 = scalar_lea.vmem [#allocation14], %s4145_s15 }
  0x8f   : > { %s449_s14 = scalar_lea.hbm %s6667_s7, %s4439_s25  ;;  %s451_s10 = sshll.u32 %s443_s4, 4  ;;  %s452_s10 = int_to_ptr.vmem [resolvable:$true] %s451_s10 }
  0x90   : > { %s5727_s21 = scalar_lea.hbm %s449_s14, 64  ;;  %p6711_p11 = pneg %p6059_p3 }
  0x91   : > { %p5728_p8 = scmp.ne.s32.totalorder %s449_s14, %s5727_s21  ;;  %s5732_s20 = scalar_lea.hbm %s6667_s7, 128 }
  0x92   : > { %p5733_p10 = scmp.lt.s32.totalorder %s449_s14, %s6667_s7  ;;  %p5734_p0 = scmp.lt.s32.totalorder %s5732_s20, %s5727_s21 }
  0x93   : > { %p5730_p9 = pnand %p5728_p8, %p6711_p11 }
  0x94   : > { %p5735_p13 = por %p5734_p0, %p5733_p10 }
  0x95   : > { %p5731_p5 = pneg %p5730_p9 }
  0x97   : > { %p5736_p6 = pnand %p5735_p13, %p5731_p5 }
  0x99   : > { %5739 = shalt.err (!%p5736_p6)
}
  0x9a   : > { %s5740_s15 = scalar_lea.vmem %s452_s10, 64  ;;  %p6712_p2 = pmov %p6711_p11 }
  0x9b   : > { %p5741_p4 = scmp.ne.s32.totalorder %s452_s10, %s5740_s15  ;;  %s5877_s19 = smov [#allocation14]  }
  0x9c   : > { %s5745_s25 = sshll.u32 %s5877_s19, 4  ;;  %s5746_s25 = int_to_ptr.vmem [resolvable:$false] %s5745_s25 }
  0x9d   : > { %p5743_p7 = pnand %p5741_p4, %p6712_p2  ;;  %s5747_s2 = scalar_lea.vmem %s5746_s25, 128 }
  0x9e   : > { %p5748_p1 = scmp.lt.s32.totalorder %s452_s10, %s5746_s25  ;;  %p5749_p8 = scmp.lt.s32.totalorder %s5747_s2, %s5740_s15 }
  0x9f   : > { %p5744_p12 = pneg %p5743_p7 }
  0xa0   : > { %p5750_p11 = por %p5749_p8, %p5748_p1 }
  0xa2   : > { %p5751_p9 = pnand %p5750_p11, %p5744_p12 }
  0xa4   : > { %5754 = shalt.err (!%p5751_p9)
}
  0xa5   : > { %5076 = dma.hbm_to_vmem [thread:$0]  (!%p6059_p3), %s449_s14, 64, %s452_s10, %s6065_s18  }
  0xa6   : > { %p6713_p5 = scmp.ne.s32.totalorder %s6693_s28, 0 }
  0xa7   : > { %p6714_p10 = scmp.eq.s32.totalorder (!%p6713_p5), %s5971_s27, 0 }
  0xa8   : > { %469 = sbr.rel (%p6713_p5) target bundleno = 2614 (0xa36), region = 60 }
  0xad   : > { %5822 = dma.done.wait (%p6714_p10), [#allocation4], 1024   ;;  %p6715_p0 = pmov %p6714_p10 }
  0xaf   : > { %5824 = vsyncadd (%p6715_p0), [#allocation4], 4294966272  ;;  %p6716_p13 = pmov %p6715_p0 }
  0xb0   : > { %p6717_p6 = pmov %p6715_p0 }
  0xb1   : > { %5826 = dma.done.wait (%p6716_p13), [#allocation7], 8208  }
  0xb2   : > { %5828 = vsyncadd (%p6717_p6), [#allocation7], 4294959088  ;;  %p6718_p4 = pmov %p6715_p0 }
  0xb3   : > { %p6719_p3 = pmov %p6715_p0 }
  0xb4   : > { %5830 = dma.done.wait (%p6718_p4), [#allocation10], 1040  }
  0xb5   : > { %5832 = vsyncadd (%p6719_p3), [#allocation10], 4294966256  ;;  %s491_s28 = sand.u32 1, %s5971_s27   ;;  %s6157_s17 = sand.u32 1, %s5855_s22  }
  0xb6   : > { %s4154_s18 = sshll.u32 %s6157_s17, 11  ;;  %s492_s16 = scalar_lea.sflag [#allocation13], %s491_s28 }
  0xb7   : > { %s6160_s14 = scalar_lea.vmem [#allocation12], %s4154_s18  ;;  %p6720_p2 = scmp.ne.s32.totalorder %s6702_s30, 0 }
  0xb9   : > { %5834 = dma.done.wait (%p6720_p2), %s492_s16, 32832  }
  0xba   : > { %5836 = vsyncadd (%p6720_p2), %s492_s16, 4294934464  ;;  %s4155_s4 = sshll.u32 %s6157_s17, 2  ;;  %p6721_p7 = pmov %p6715_p0 }
  0xbb   : > { %s6167_s10 = scalar_lea.vmem [#allocation14], %s4155_s4 }
  0xbc   : > { %5838 = dma.done.wait (%p6721_p7), [#allocation16], 16   ;;  %p6722_p12 = pmov %p6715_p0 }
  0xbd   : > { %s4157_s21 = sshll.u32 %s6157_s17, 3  ;;  %s4158_s13 = sshll.u32 %s5971_s27, 2 }
  0xbe   : > { %5840 = vsyncadd (%p6722_p12), [#allocation16], 4294967280  ;;  %p562_p1 = scmp.lt.s32.totalorder %s4158_s13, 7  ;;  %s6180_s26 = scalar_lea.vmem [#allocation18], %s4157_s21 }
  0xbf   : > { %p6723_p8 = scmp.ne.s32.totalorder %s5971_s27, 0 }
  0xc0   : > { %s6741_s13 = smov (!%p562_p1, %s4158_s13), 7 }
  0xc1   : > { %s4159_s29 = sshll.u32 %s6741_s13, 2  ;;  %571 = sbr.rel (%p6723_p8) target bundleno = 1886 (0x75e), region = 96 }
  0xc2   : > { %s6178_s6 = scalar_lea.vmem %s6668_s8, %s4159_s29 }
  0xc6   : > { %v1267_v0 = vld [vmem:[%s6660_s0] sm:$0xff]  ;;  %vm1268_vm0 = vcmask 15360   ;;  %v4742_v8 = vld [vmem:[#allocation6 + $0x70] sm:$0xff]   ;;  %v4741_v21 = vld [vmem:[#allocation6 + $0x68] sm:$0xff]   ;;  %vm1877_vm1 = vcmask 8192   ;;  %vm5879_vm2 = vmmov 0  }
  0xc7   : > { %v4743_v1 = vld [vmem:[#allocation6 + $0x78] sm:$0xff]   ;;  %v1269_v3 = vsel %vm1268_vm0, %v1267_v0, -inf  ;;  %v4758_v13 = vld [vmem:[#allocation6 + $0xf0] sm:$0xff]   ;;  %v4500_v18 = vunpack.c.h.bf16 %v4742_v8  ;;  %v4499_v23 = vunpack.c.l.bf16 %v4742_v8  ;;  %v4757_v24 = vld [vmem:[#allocation6 + $0xe8] sm:$0xff]   ;;  %v4496_v30 = vunpack.c.h.bf16 %v4741_v21 }
  0xc8   : > { %v4759_v2 = vld [vmem:[#allocation6 + $0xf8] sm:$0xff]   ;;  %v4503_v4 = vunpack.c.l.bf16 %v4743_v1  ;;  %v4504_v5 = vunpack.c.h.bf16 %v4743_v1  ;;  %1270 = vmax.xlane.f32.xlu0 %v1269_v3  ;;  %v4734_v14 = vld [vmem:[#allocation6 + $0x30] sm:$0xff]   ;;  %v4564_v19 = vunpack.c.h.bf16 %v4758_v13  ;;  %v4733_v25 = vld [vmem:[#allocation6 + $0x28] sm:$0xff]   ;;  %v4563_v26 = vunpack.c.l.bf16 %v4758_v13 }
  0xc9   : > { %v4735_v6 = vld [vmem:[#allocation6 + $0x38] sm:$0xff]   ;;  %v4567_v9 = vunpack.c.l.bf16 %v4759_v2  ;;  %v4568_v10 = vunpack.c.h.bf16 %v4759_v2  ;;  %v4750_v15 = vld [vmem:[#allocation6 + $0xb0] sm:$0xff]   ;;  %v4468_v20 = vunpack.c.h.bf16 %v4734_v14  ;;  %v4467_v27 = vunpack.c.l.bf16 %v4734_v14  ;;  %v4749_v28 = vld [vmem:[#allocation6 + $0xa8] sm:$0xff]  }
  0xca   : > { %v4751_v7 = vld [vmem:[#allocation6 + $0xb8] sm:$0xff]   ;;  %v4471_v11 = vunpack.c.l.bf16 %v4735_v6  ;;  %v4472_v12 = vunpack.c.h.bf16 %v4735_v6  ;;  %4799 = vmatprep.subr.mxu0 %v4504_v5  ;;  %v4532_v22 = vunpack.c.h.bf16 %v4750_v15  ;;  %v4531_v29 = vunpack.c.l.bf16 %v4750_v15  ;;  %v4740_v33 = vld [vmem:[#allocation6 + $0x60] sm:$0xff]   ;;  %v4738_v57 = vld [vmem:[#allocation6 + $0x50] sm:$0xff]  }
  0xcb   : > { %v4535_v16 = vunpack.c.l.bf16 %v4751_v7  ;;  %v4536_v17 = vunpack.c.h.bf16 %v4751_v7  ;;  %4834 = vmatprep.subr.mxu1 %v4568_v10  ;;  %v4560_v31 = vunpack.c.h.bf16 %v4757_v24  ;;  %v4464_v32 = vunpack.c.h.bf16 %v4733_v25  ;;  %v4756_v36 = vld [vmem:[#allocation6 + $0xe0] sm:$0xff]   ;;  %v4739_v45 = vld [vmem:[#allocation6 + $0x58] sm:$0xff]   ;;  %v4754_v60 = vld [vmem:[#allocation6 + $0xd0] sm:$0xff]  }
  0xcc   : > { %4800 = vmatpush3.msra.mxu0 %v4472_v12  ;;  %v4528_v34 = vunpack.c.h.bf16 %v4749_v28  ;;  %v4495_v35 = vunpack.c.l.bf16 %v4741_v21  ;;  %v4732_v37 = vld [vmem:[#allocation6 + $0x20] sm:$0xff]   ;;  %v4559_v38 = vunpack.c.l.bf16 %v4757_v24  ;;  %v4463_v39 = vunpack.c.l.bf16 %v4733_v25  ;;  %v4755_v48 = vld [vmem:[#allocation6 + $0xd8] sm:$0xff]   ;;  %v4730_v61 = vld [vmem:[#allocation6 + $0x10] sm:$0xff]  }
  0xcd   : > { %4835 = vmatpush3.msra.mxu1 %v4536_v17  ;;  %4801 = vmatprep.subr.mxu0 %v4503_v4  ;;  %v4748_v40 = vld [vmem:[#allocation6 + $0xa0] sm:$0xff]   ;;  %v4527_v41 = vunpack.c.l.bf16 %v4749_v28  ;;  %v4492_v42 = vunpack.c.h.bf16 %v4740_v33  ;;  %v4556_v43 = vunpack.c.h.bf16 %v4756_v36  ;;  %v4460_v44 = vunpack.c.h.bf16 %v4732_v37  ;;  %v4731_v49 = vld [vmem:[#allocation6 + $0x18] sm:$0xff]   ;;  %v4746_v0 = vld [vmem:[#allocation6 + $0x90] sm:$0xff]  }
  0xce   : > { %4836 = vmatprep.subr.mxu1 %v4567_v9  ;;  %4802 = vmatpush3.msra.mxu0 %v4471_v11  ;;  %v4524_v46 = vunpack.c.h.bf16 %v4748_v40  ;;  %v4491_v47 = vunpack.c.l.bf16 %v4740_v33  ;;  %v4555_v50 = vunpack.c.l.bf16 %v4756_v36  ;;  %v4459_v51 = vunpack.c.l.bf16 %v4732_v37  ;;  %v4747_v52 = vld [vmem:[#allocation6 + $0x98] sm:$0xff]   ;;  %v4737_v5 = vld [vmem:[#allocation6 + $0x48] sm:$0xff]   ;;  %v4736_v17 = vld [vmem:[#allocation6 + $0x40] sm:$0xff]  }
  0xcf   : > { %4837 = vmatpush3.msra.mxu1 %v4535_v16  ;;  %4803 = vmatprep.subr.mxu0 %v4500_v18  ;;  %v4523_v53 = vunpack.c.l.bf16 %v4748_v40  ;;  %v4488_v54 = vunpack.c.h.bf16 %v4739_v45  ;;  %v4552_v55 = vunpack.c.h.bf16 %v4755_v48  ;;  %v4456_v56 = vunpack.c.h.bf16 %v4731_v49  ;;  %v4753_v8 = vld [vmem:[#allocation6 + $0xc8] sm:$0xff]   ;;  %v4442_v21 = vld [vmem:[#allocation6] sm:$0xff]   ;;  %v4775_v33 = vld [vmem:[#allocation6 + $0x178] sm:$0xff]  }
  0xd0   : > { %4838 = vmatprep.subr.mxu1 %v4564_v19  ;;  %4804 = vmatpush3.msra.mxu0 %v4468_v20  ;;  %v4520_v58 = vunpack.c.h.bf16 %v4747_v52  ;;  %v4487_v59 = vunpack.c.l.bf16 %v4739_v45  ;;  %v4551_v62 = vunpack.c.l.bf16 %v4755_v48  ;;  %v4455_v63 = vunpack.c.l.bf16 %v4731_v49  ;;  %v4729_v9 = vld [vmem:[#allocation6 + $0x8] sm:$0xff]   ;;  %v4752_v20 = vld [vmem:[#allocation6 + $0xc0] sm:$0xff]   ;;  %v4767_v36 = vld [vmem:[#allocation6 + $0x138] sm:$0xff]  }
  0xd1   : > { %4839 = vmatpush3.msra.mxu1 %v4532_v22  ;;  %4805 = vmatprep.subr.mxu0 %v4499_v23  ;;  %v4519_v1 = vunpack.c.l.bf16 %v4747_v52  ;;  %v4484_v2 = vunpack.c.h.bf16 %v4738_v57  ;;  %v4548_v3 = vunpack.c.h.bf16 %v4754_v60  ;;  %v4452_v4 = vunpack.c.h.bf16 %v4730_v61  ;;  %v4745_v12 = vld [vmem:[#allocation6 + $0x88] sm:$0xff]   ;;  %v4744_v24 = vld [vmem:[#allocation6 + $0x80] sm:$0xff]   ;;  %v6192_v40 = vld [vmem:[#allocation3 + $0x18] sm:$0xff] }
  0xd2   : > { %4840 = vmatprep.subr.mxu1 %v4563_v26  ;;  %4806 = vmatpush3.msra.mxu0 %v4467_v27  ;;  %v4516_v6 = vunpack.c.h.bf16 %v4746_v0  ;;  %v4483_v7 = vunpack.c.l.bf16 %v4738_v57  ;;  %v4547_v10 = vunpack.c.l.bf16 %v4754_v60  ;;  %v4451_v11 = vunpack.c.l.bf16 %v4730_v61  ;;  %v6188_v37 = vld [vmem:[#allocation3 + $0x8] sm:$0xff]  ;;  %v6195_v45 = vld [vmem:[#allocation3 + $0x10] sm:$0xff] }
  0xd3   : > { %4841 = vmatpush3.msra.mxu1 %v4531_v29  ;;  %4807 = vmatprep.subr.mxu0 %v4496_v30  ;;  %v4515_v13 = vunpack.c.l.bf16 %v4746_v0  ;;  %v4480_v14 = vunpack.c.h.bf16 %v4737_v5  ;;  %v4544_v15 = vunpack.c.h.bf16 %v4753_v8  ;;  %v4448_v16 = vunpack.c.h.bf16 %v4729_v9  ;;  %v4790_v48 = vld [vmem:[#allocation6 + $0x1f0] sm:$0xff]   ;;  %v4773_v57 = vld [vmem:[#allocation6 + $0x168] sm:$0xff]  }
  0xd4   : > { %4842 = vmatprep.subr.mxu1 %v4560_v31  ;;  %4808 = vmatpush3.msra.mxu0 %v4464_v32  ;;  %v4512_v18 = vunpack.c.h.bf16 %v4745_v12  ;;  %v4479_v19 = vunpack.c.l.bf16 %v4737_v5  ;;  %v4543_v22 = vunpack.c.l.bf16 %v4753_v8  ;;  %v4447_v23 = vunpack.c.l.bf16 %v4729_v9  ;;  %v4766_v49 = vld [vmem:[#allocation6 + $0x130] sm:$0xff]   ;;  %v4789_v60 = vld [vmem:[#allocation6 + $0x1e8] sm:$0xff]   ;;  %v4772_v5 = vld [vmem:[#allocation6 + $0x160] sm:$0xff]  }
  0xd5   : > { %4843 = vmatpush3.msra.mxu1 %v4528_v34  ;;  %4809 = vmatprep.subr.mxu0 %v4495_v35  ;;  %v4511_v25 = vunpack.c.l.bf16 %v4745_v12  ;;  %v4476_v26 = vunpack.c.h.bf16 %v4736_v17  ;;  %v4540_v27 = vunpack.c.h.bf16 %v4752_v20  ;;  %v4444_v28 = vunpack.c.h.bf16 %v4442_v21  ;;  %v4791_v34 = vld [vmem:[#allocation6 + $0x1f8] sm:$0xff]   ;;  %v4782_v52 = vld [vmem:[#allocation6 + $0x1b0] sm:$0xff]   ;;  %v4765_v61 = vld [vmem:[#allocation6 + $0x128] sm:$0xff]  }
  0xd6   : > { %4844 = vmatprep.subr.mxu1 %v4559_v38  ;;  %4810 = vmatpush3.msra.mxu0 %v4463_v39  ;;  %v4508_v29 = vunpack.c.h.bf16 %v4744_v24  ;;  %v4475_v30 = vunpack.c.l.bf16 %v4736_v17  ;;  %v4539_v31 = vunpack.c.l.bf16 %v4752_v20  ;;  %v4443_v32 = vunpack.c.l.bf16 %v4442_v21  ;;  %v4783_v38 = vld [vmem:[#allocation6 + $0x1b8] sm:$0xff]   ;;  %v6190_v39 = vld [vmem:[#allocation3] sm:$0xff]  ;;  %v4781_v0 = vld [vmem:[#allocation6 + $0x1a8] sm:$0xff]  }
  0xd7   : > { %4845 = vmatpush3.msra.mxu1 %v4527_v41  ;;  %4811 = vmatprep.subr.mxu0 %v4492_v42  ;;  %v4507_v35 = vunpack.c.l.bf16 %v4744_v24  ;;  %v4632_v41 = vunpack.c.h.bf16 %v4775_v33  ;;  %v4696_v42 = vunpack.c.h.bf16 %v4791_v34  ;;  %v4788_v8 = vld [vmem:[#allocation6 + $0x1e0] sm:$0xff]   ;;  %v4771_v17 = vld [vmem:[#allocation6 + $0x158] sm:$0xff]   ;;  %vm1326_vm14 = vcmask 1040384  }
  0xd8   : > { %4846 = vmatprep.subr.mxu1 %v4556_v43  ;;  %4812 = vmatpush3.msra.mxu0 %v4460_v44  ;;  %v4600_v43 = vunpack.c.h.bf16 %v4767_v36  ;;  %v4774_v44 = vld [vmem:[#allocation6 + $0x170] sm:$0xff]   ;;  %v4764_v9 = vld [vmem:[#allocation6 + $0x120] sm:$0xff]   ;;  %v4787_v20 = vld [vmem:[#allocation6 + $0x1d8] sm:$0xff]   ;;  %vm1328_vm15 = vcmask 64512  }
  0xd9   : > { %4847 = vmatpush3.msra.mxu1 %v4524_v46  ;;  %4813 = vmatprep.subr.mxu0 %v4491_v47  ;;  %v4664_v46 = vunpack.c.h.bf16 %v4783_v38  ;;  %v4631_v47 = vunpack.c.l.bf16 %v4775_v33  ;;  %v4780_v12 = vld [vmem:[#allocation6 + $0x1a0] sm:$0xff]   ;;  %v4763_v21 = vld [vmem:[#allocation6 + $0x118] sm:$0xff]   ;;  %v4762_v33 = vld [vmem:[#allocation6 + $0x110] sm:$0xff]  }
  0xda   : > { %4848 = vmatprep.subr.mxu1 %v4555_v50  ;;  %4814 = vmatpush3.msra.mxu0 %v4459_v51  ;;  %v4695_v50 = vunpack.c.l.bf16 %v4791_v34  ;;  %v4599_v51 = vunpack.c.l.bf16 %v4767_v36  ;;  %v4779_v24 = vld [vmem:[#allocation6 + $0x198] sm:$0xff]   ;;  %v4679_v34 = vunpack.c.l.bf16 %v4787_v20  ;;  %v4778_v36 = vld [vmem:[#allocation6 + $0x190] sm:$0xff]  }
  0xdb   : > { %4849 = vmatpush3.msra.mxu1 %v4523_v53  ;;  %4815 = vmatprep.subr.mxu0 %v4488_v54  ;;  %v4663_v53 = vunpack.c.l.bf16 %v4783_v38  ;;  %v4628_v54 = vunpack.c.h.bf16 %v4774_v44  ;;  %v4647_v38 = vunpack.c.l.bf16 %v4779_v24 }
  0xdc   : > { %4850 = vmatprep.subr.mxu1 %v4552_v55  ;;  %4816 = vmatpush3.msra.mxu0 %v4456_v56  ;;  %v4692_v55 = vunpack.c.h.bf16 %v4790_v48  ;;  %v4596_v56 = vunpack.c.h.bf16 %v4766_v49 }
  0xdd   : > { %4851 = vmatpush3.msra.mxu1 %v4520_v58  ;;  %4817 = vmatprep.subr.mxu0 %v4487_v59  ;;  %v4660_v58 = vunpack.c.h.bf16 %v4782_v52  ;;  %v4627_v59 = vunpack.c.l.bf16 %v4774_v44  ;;  %v4769_v44 = vld [vmem:[#allocation6 + $0x148] sm:$0xff]  }
  0xde   : > { %4852 = vmatprep.subr.mxu1 %v4551_v62  ;;  %4818 = vmatpush3.msra.mxu0 %v4455_v63  ;;  %v4691_v62 = vunpack.c.l.bf16 %v4790_v48  ;;  %v4595_v63 = vunpack.c.l.bf16 %v4766_v49  ;;  %v4785_v48 = vld [vmem:[#allocation6 + $0x1c8] sm:$0xff]  }
  0xdf   : > { %4853 = vmatpush3.msra.mxu1 %v4519_v1  ;;  %4819 = vmatprep.subr.mxu0 %v4484_v2  ;;  %v4659_v1 = vunpack.c.l.bf16 %v4782_v52  ;;  %v4624_v2 = vunpack.c.h.bf16 %v4773_v57  ;;  %v4761_v49 = vld [vmem:[#allocation6 + $0x108] sm:$0xff]  }
  0xe0   : > { %4854 = vmatprep.subr.mxu1 %v4548_v3  ;;  %4820 = vmatpush3.msra.mxu0 %v4452_v4  ;;  %v4688_v3 = vunpack.c.h.bf16 %v4789_v60  ;;  %v4592_v4 = vunpack.c.h.bf16 %v4765_v61  ;;  %v4777_v52 = vld [vmem:[#allocation6 + $0x188] sm:$0xff]  }
  0xe1   : > { %4855 = vmatpush3.msra.mxu1 %v4516_v6  ;;  %4821 = vmatprep.subr.mxu0 %v4483_v7  ;;  %v4656_v6 = vunpack.c.h.bf16 %v4781_v0  ;;  %v4623_v7 = vunpack.c.l.bf16 %v4773_v57  ;;  %v4768_v57 = vld [vmem:[#allocation6 + $0x140] sm:$0xff]  }
  0xe2   : > { %4856 = vmatprep.subr.mxu1 %v4547_v10  ;;  %4822 = vmatpush3.msra.mxu0 %v4451_v11  ;;  %v4687_v10 = vunpack.c.l.bf16 %v4789_v60  ;;  %v4591_v11 = vunpack.c.l.bf16 %v4765_v61  ;;  %v4784_v60 = vld [vmem:[#allocation6 + $0x1c0] sm:$0xff]  }
  0xe3   : > { %4857 = vmatpush3.msra.mxu1 %v4515_v13  ;;  %4823 = vmatprep.subr.mxu0 %v4480_v14  ;;  %v4655_v13 = vunpack.c.l.bf16 %v4781_v0  ;;  %v4620_v14 = vunpack.c.h.bf16 %v4772_v5  ;;  %v4760_v61 = vld [vmem:[#allocation6 + $0x100] sm:$0xff]  }
  0xe4   : > { %4858 = vmatprep.subr.mxu1 %v4544_v15  ;;  %4824 = vmatpush3.msra.mxu0 %v4448_v16  ;;  %v4684_v15 = vunpack.c.h.bf16 %v4788_v8  ;;  %v4588_v16 = vunpack.c.h.bf16 %v4764_v9  ;;  %v4776_v0 = vld [vmem:[#allocation6 + $0x180] sm:$0xff]  }
  0xe5   : > { %4859 = vmatpush3.msra.mxu1 %v4512_v18  ;;  %4825 = vmatprep.subr.mxu0 %v4479_v19  ;;  %v4652_v18 = vunpack.c.h.bf16 %v4780_v12  ;;  %v4619_v19 = vunpack.c.l.bf16 %v4772_v5  ;;  %v4636_v5 = vunpack.c.h.bf16 %v4776_v0 }
  0xe6   : > { %4860 = vmatprep.subr.mxu1 %v4543_v22  ;;  %4826 = vmatpush3.msra.mxu0 %v4447_v23  ;;  %v4683_v22 = vunpack.c.l.bf16 %v4788_v8  ;;  %v4587_v23 = vunpack.c.l.bf16 %v4764_v9  ;;  %v4571_v8 = vunpack.c.l.bf16 %v4760_v61  ;;  %v4635_v9 = vunpack.c.l.bf16 %v4776_v0  ;;  %v4161_v0 = vld [vmem:[#allocation8] ss:$0 sm:$0xff] }
  0xe7   : > { %4861 = vmatpush3.msra.mxu1 %v4511_v25  ;;  %4827 = vmatprep.subr.mxu0 %v4476_v26  ;;  %v4651_v25 = vunpack.c.l.bf16 %v4780_v12  ;;  %v4616_v26 = vunpack.c.h.bf16 %v4771_v17  ;;  %v6204_v12 = vld [vmem:[#allocation3 + $0x20] sm:$0xff] }
  0xe8   : > { %4862 = vmatprep.subr.mxu1 %v4540_v27  ;;  %4828 = vmatpush3.msra.mxu0 %v4444_v28  ;;  %v4680_v27 = vunpack.c.h.bf16 %v4787_v20  ;;  %v4584_v28 = vunpack.c.h.bf16 %v4763_v21  ;;  %v4796_v20 = vld [vmem:[#allocation9 + $0x28] sm:$0xff]  }
  0xe9   : > { %4863 = vmatpush3.msra.mxu1 %v4508_v29  ;;  %4829 = vmatprep.subr.mxu0 %v4475_v30  ;;  %v4770_v29 = vld [vmem:[#allocation6 + $0x150] sm:$0xff]   ;;  %v4648_v30 = vunpack.c.h.bf16 %v4779_v24  ;;  %v4719_v24 = vunpack.c.l.bf16 %v4796_v20 }
  0xea   : > { %4864 = vmatprep.subr.mxu1 %v4539_v31  ;;  %4830 = vmatpush3.msra.mxu0 %v4443_v32  ;;  %v4615_v31 = vunpack.c.l.bf16 %v4771_v17  ;;  %v4786_v32 = vld [vmem:[#allocation6 + $0x1d0] sm:$0xff]  }
  0xeb   : > { %907 = vmatprep.mubr.f32.mxu0 %v6188_v37  ;;  %4865 = vmatpush3.msra.mxu1 %v4507_v35  ;;  %v4583_v35 = vunpack.c.l.bf16 %v4763_v21 }
  0xec   : > { %908 = vmatmul.mubr.f32.vlgmr.msra.gmra.mxu0 %v6190_v39  ;;  %977 = vmatprep.mubr.f32.mxu1 %v6192_v40 }
  0xed   : > { %4869 = vmatprep.subr.mxu0 %v4632_v41  ;;  %4904 = vmatprep.subr.mxu1 %v4696_v42  ;;  %v4612_v41 = vunpack.c.h.bf16 %v4770_v29  ;;  %v4676_v42 = vunpack.c.h.bf16 %v4786_v32 }
  0xee   : > { %978 = vmatmul.mubr.f32.vlgmr.msra.gmra.mxu1 %v6195_v45  ;;  %4870 = vmatpush3.msra.mxu0 %v4600_v43  ;;  %v4580_v43 = vunpack.c.h.bf16 %v4762_v33 }
  0xef   : > { %4905 = vmatpush3.msra.mxu1 %v4664_v46  ;;  %4871 = vmatprep.subr.mxu0 %v4631_v47  ;;  %v4644_v46 = vunpack.c.h.bf16 %v4778_v36  ;;  %v4611_v47 = vunpack.c.l.bf16 %v4770_v29 }
  0xf0   : > { %4906 = vmatprep.subr.mxu1 %v4695_v50  ;;  %4872 = vmatpush3.msra.mxu0 %v4599_v51  ;;  %v4675_v50 = vunpack.c.l.bf16 %v4786_v32  ;;  %v4579_v51 = vunpack.c.l.bf16 %v4762_v33  ;;  %v4792_v33 = vld [vmem:[#allocation9 + $0x8] sm:$0xff]  }
  0xf1   : > { %4907 = vmatpush3.msra.mxu1 %v4663_v53  ;;  %4873 = vmatprep.subr.mxu0 %v4628_v54  ;;  %v4643_v53 = vunpack.c.l.bf16 %v4778_v36  ;;  %v4608_v54 = vunpack.c.h.bf16 %v4769_v44  ;;  %v4703_v36 = vunpack.c.l.bf16 %v4792_v33 }
  0xf2   : > { %4908 = vmatprep.subr.mxu1 %v4692_v55  ;;  %4874 = vmatpush3.msra.mxu0 %v4596_v56  ;;  %v4672_v55 = vunpack.c.h.bf16 %v4785_v48  ;;  %v4576_v56 = vunpack.c.h.bf16 %v4761_v49 }
  0xf3   : > { %4909 = vmatpush3.msra.mxu1 %v4660_v58  ;;  %4875 = vmatprep.subr.mxu0 %v4627_v59  ;;  %v4640_v58 = vunpack.c.h.bf16 %v4777_v52  ;;  %v4607_v59 = vunpack.c.l.bf16 %v4769_v44 }
  0xf4   : > { %4910 = vmatprep.subr.mxu1 %v4691_v62  ;;  %4876 = vmatpush3.msra.mxu0 %v4595_v63  ;;  %v4671_v62 = vunpack.c.l.bf16 %v4785_v48  ;;  %v4575_v63 = vunpack.c.l.bf16 %v4761_v49 }
  0xf5   : > { %4911 = vmatpush3.msra.mxu1 %v4659_v1  ;;  %4877 = vmatprep.subr.mxu0 %v4624_v2  ;;  %v4639_v1 = vunpack.c.l.bf16 %v4777_v52  ;;  %v4604_v2 = vunpack.c.h.bf16 %v4768_v57 }
  0xf6   : > { %4912 = vmatprep.subr.mxu1 %v4688_v3  ;;  %4878 = vmatpush3.msra.mxu0 %v4592_v4  ;;  %v4668_v3 = vunpack.c.h.bf16 %v4784_v60  ;;  %v4572_v4 = vunpack.c.h.bf16 %v4760_v61 }
  0xf7   : > { %4913 = vmatpush3.msra.mxu1 %v4656_v6  ;;  %4879 = vmatprep.subr.mxu0 %v4623_v7  ;;  %v4603_v6 = vunpack.c.l.bf16 %v4768_v57  ;;  %v4667_v7 = vunpack.c.l.bf16 %v4784_v60 }
  0xf8   : > { %4914 = vmatprep.subr.mxu1 %v4687_v10  ;;  %4880 = vmatpush3.msra.mxu0 %v4591_v11  ;;  %v6200_v10 = vld [vmem:[#allocation3 + $0x28] sm:$0xff]  ;;  %v6202_v11 = vld [vmem:[#allocation3 + $0x38] sm:$0xff] }
  0xf9   : > { %4915 = vmatpush3.msra.mxu1 %v4655_v13  ;;  %4881 = vmatprep.subr.mxu0 %v4620_v14  ;;  %v6206_v13 = vld [vmem:[#allocation3 + $0x30] sm:$0xff]  ;;  %v4798_v14 = vld [vmem:[#allocation9 + $0x38] sm:$0xff]  }
  0xfa   : > { %4916 = vmatprep.subr.mxu1 %v4684_v15  ;;  %4882 = vmatpush3.msra.mxu0 %v4588_v16  ;;  %v4797_v15 = vld [vmem:[#allocation9 + $0x30] sm:$0xff]   ;;  %v5878_v16 = vmov 0.0   ;;  %v4728_v17 = vunpack.c.h.bf16 %v4798_v14 }
  0xfb   : > { %4917 = vmatpush3.msra.mxu1 %v4652_v18  ;;  %4883 = vmatprep.subr.mxu0 %v4619_v19  ;;  %1878 = vst.msk [vmem:[#allocation17] sm:$0x1] %vm1877_vm1, %v5878_v16  ;;  %v4727_v18 = vunpack.c.l.bf16 %v4798_v14  ;;  %v4724_v19 = vunpack.c.h.bf16 %v4797_v15  ;;  %v4723_v21 = vunpack.c.l.bf16 %v4797_v15 }
  0xfc   : > { %4918 = vmatprep.subr.mxu1 %v4683_v22  ;;  %4884 = vmatpush3.msra.mxu0 %v4587_v23  ;;  %v4720_v22 = vunpack.c.h.bf16 %v4796_v20  ;;  %v4795_v23 = vld [vmem:[#allocation9 + $0x20] sm:$0xff]  }
  0xfd   : > { %4919 = vmatpush3.msra.mxu1 %v4651_v25  ;;  %4885 = vmatprep.subr.mxu0 %v4616_v26  ;;  %v4716_v25 = vunpack.c.h.bf16 %v4795_v23  ;;  %v4794_v26 = vld [vmem:[#allocation9 + $0x18] sm:$0xff]  }
  0xfe   : > { %4920 = vmatprep.subr.mxu1 %v4680_v27  ;;  %4886 = vmatpush3.msra.mxu0 %v4584_v28  ;;  %v4715_v27 = vunpack.c.l.bf16 %v4795_v23  ;;  %v4712_v28 = vunpack.c.h.bf16 %v4794_v26  ;;  %v4711_v29 = vunpack.c.l.bf16 %v4794_v26 }
  0xff   : > { %4921 = vmatpush3.msra.mxu1 %v4648_v30  ;;  %4887 = vmatprep.subr.mxu0 %v4615_v31  ;;  %v4793_v30 = vld [vmem:[#allocation9 + $0x10] sm:$0xff]  }
 0x100   : > { %4922 = vmatprep.subr.mxu1 %v4679_v34  ;;  %4888 = vmatpush3.msra.mxu0 %v4583_v35  ;;  %v4708_v31 = vunpack.c.h.bf16 %v4793_v30  ;;  %v4707_v32 = vunpack.c.l.bf16 %v4793_v30  ;;  %v4704_v34 = vunpack.c.h.bf16 %v4792_v33 }
 0x101   : > { %4923 = vmatpush3.msra.mxu1 %v4647_v38  ;;  %4889 = vmatprep.subr.mxu0 %v4612_v41  ;;  %v4698_v41 = vld [vmem:[#allocation9] sm:$0xff]  }
 0x102   : > { %4924 = vmatprep.subr.mxu1 %v4676_v42  ;;  %4890 = vmatpush3.msra.mxu0 %v4580_v43  ;;  %v4700_v42 = vunpack.c.h.bf16 %v4698_v41  ;;  %v4699_v44 = vunpack.c.l.bf16 %v4698_v41 }
 0x103   : > { %4925 = vmatpush3.msra.mxu1 %v4644_v46  ;;  %4891 = vmatprep.subr.mxu0 %v4611_v47 }
 0x104   : > { %4926 = vmatprep.subr.mxu1 %v4675_v50  ;;  %4892 = vmatpush3.msra.mxu0 %v4579_v51  ;;  %v1272_v50 = vlaneseq }
 0x105   : > { %4927 = vmatpush3.msra.mxu1 %v4643_v53  ;;  %4893 = vmatprep.subr.mxu0 %v4608_v54 }
 0x106   : > { %4928 = vmatprep.subr.mxu1 %v4672_v55  ;;  %4894 = vmatpush3.msra.mxu0 %v4576_v56  ;;  %v6235_v51 = vshrl.u32 %v1272_v50, 7 }
 0x107   : > { %4929 = vmatpush3.msra.mxu1 %v4640_v58  ;;  %4895 = vmatprep.subr.mxu0 %v4607_v59 }
 0x108   : > { %4930 = vmatprep.subr.mxu1 %v4671_v62  ;;  %4896 = vmatpush3.msra.mxu0 %v4575_v63 }
 0x109   : > { %4931 = vmatpush3.msra.mxu1 %v4639_v1  ;;  %4897 = vmatprep.subr.mxu0 %v4604_v2 }
 0x10a   : > { %4932 = vmatprep.subr.mxu1 %v4668_v3  ;;  %4898 = vmatpush3.msra.mxu0 %v4572_v4 }
 0x10b   : > { %4933 = vmatpush3.msra.mxu1 %v4636_v5  ;;  %4899 = vmatprep.subr.mxu0 %v4603_v6 }
 0x10c   : > { %4934 = vmatprep.subr.mxu1 %v4667_v7  ;;  %4900 = vmatpush3.msra.mxu0 %v4571_v8 }
 0x10d   : > { %1047 = vmatprep.mubr.f32.mxu0 %v6200_v10  ;;  %4935 = vmatpush3.msra.mxu1 %v4635_v9 }
 0x10e   : > { %1117 = vmatprep.mubr.f32.mxu1 %v6202_v11  ;;  %1048 = vmatmul.mubr.f32.vlgmr.msra.gmra.mxu0 %v6204_v12 }
 0x10f   : > { %1118 = vmatmul.mubr.f32.vlgmr.msra.gmra.mxu1 %v6206_v13  ;;  %4960 = vmatprep.subr.mxu0 %v5878_v16 }
 0x110   : > { %4995 = vmatprep.subr.mxu1 %v5878_v16  ;;  %4961 = vmatpush3.msra.mxu0 %v4728_v17 }
 0x111   : > { %4962 = vmatprep.subr.mxu0 %v5878_v16  ;;  %4992 = vmatprep.mubr.msk.f32.mxu0 %vm5879_vm2, %v5878_v16 }
 0x112   : > { %4963 = vmatpush3.msra.mxu0 %v4727_v18  ;;  %4997 = vmatprep.mubr.msk.f32.mxu1 %vm5879_vm2, %v5878_v16 }
 0x113   : > { %4964 = vmatprep.subr.mxu0 %v5878_v16 }
 0x114   : > { %4965 = vmatpush3.msra.mxu0 %v4724_v19 }
 0x115   : > { %4966 = vmatprep.subr.mxu0 %v5878_v16 }
 0x116   : > { %4967 = vmatpush3.msra.mxu0 %v4723_v21 }
 0x117   : > { %4968 = vmatprep.subr.mxu0 %v5878_v16 }
 0x118   : > { %4969 = vmatpush3.msra.mxu0 %v4720_v22 }
 0x119   : > { %4970 = vmatprep.subr.mxu0 %v5878_v16 }
 0x11a   : > { %4971 = vmatpush3.msra.mxu0 %v4719_v24 }
 0x11b   : > { %4972 = vmatprep.subr.mxu0 %v5878_v16 }
 0x11c   : > { %4973 = vmatpush3.msra.mxu0 %v4716_v25 }
 0x11d   : > { %4974 = vmatprep.subr.mxu0 %v5878_v16 }
 0x11e   : > { %4975 = vmatpush3.msra.mxu0 %v4715_v27 }
 0x11f   : > { %4976 = vmatprep.subr.mxu0 %v5878_v16 }
 0x120   : > { %4977 = vmatpush3.msra.mxu0 %v4712_v28 }
 0x121   : > { %4978 = vmatprep.subr.mxu0 %v5878_v16 }
 0x122   : > { %4979 = vmatpush3.msra.mxu0 %v4711_v29 }
 0x123   : > { %4980 = vmatprep.subr.mxu0 %v5878_v16 }
 0x124   : > { %4981 = vmatpush3.msra.mxu0 %v4708_v31 }
 0x125   : > { %4982 = vmatprep.subr.mxu0 %v5878_v16 }
 0x126   : > { %4983 = vmatpush3.msra.mxu0 %v4707_v32 }
 0x127   : > { %4984 = vmatprep.subr.mxu0 %v5878_v16 }
 0x128   : > { %4985 = vmatpush3.msra.mxu0 %v4704_v34 }
 0x129   : > { %4986 = vmatprep.subr.mxu0 %v5878_v16 }
 0x12a   : > { %4987 = vmatpush3.msra.mxu0 %v4703_v36 }
 0x12b   : > { %4988 = vmatprep.subr.mxu0 %v5878_v16 }
 0x12c   : > { %4989 = vmatpush3.msra.mxu0 %v4700_v42 }
 0x12d   : > { %4990 = vmatprep.subr.mxu0 %v5878_v16 }
 0x12e   : > { %4991 = vmatpush3.msra.mxu0 %v4699_v44 }
 0x151   : > { %v1271_v35 = vpop.xlane.xlu0 %1270 }
 0x152   : > { %v1276_v38 = vrot.slane %v1271_v35, 4 }
 0x154   : > { %v1277_v43 = vmax.f32 %v1271_v35, %v1276_v38 }
 0x156   : > { %v1278_v46 = vrot.slane %v1277_v43, 2 }
 0x158   : > { %v1279_v47 = vmax.f32 %v1277_v43, %v1278_v46  ;;  %v1275_v43 = vand.u32 127, %v1272_v50 }
 0x15a   : > { %v1280_v48 = vrot.slane %v1279_v47, 1 }
 0x15c   : > { %v1281_v49 = vmax.f32 %v1279_v47, %v1280_v48 }
 0x15e   : > { %5005 = vpush %v1281_v49 }
 0x18f   : > { %s5006_s25 = spop %5005 }
 0x190   : > { %v1283_v52 = vstv %s5006_s25 }
 0x191   : > { %vm1284_vm3 = vcmp.eq.f32.partialorder %v1271_v35, %v1283_v52 }
 0x192   : > { %v1285_v53 = vsel %vm1284_vm3, %v6235_v51, 8 }
 0x193   : > { %v1286_v54 = vrot.slane %v1285_v53, 4 }
 0x195   : > { %vm1287_vm4 = vcmp.lt.s32.totalorder %v1285_v53, %v1286_v54 }
 0x196   : > { %v1288_v55 = vsel %vm1287_vm4, %v1285_v53, %v1286_v54 }
 0x197   : > { %v1289_v56 = vrot.slane %v1288_v55, 2 }
 0x199   : > { %vm1290_vm5 = vcmp.lt.s32.totalorder %v1288_v55, %v1289_v56 }
 0x19a   : > { %v1291_v57 = vsel %vm1290_vm5, %v1288_v55, %v1289_v56 }
 0x19b   : > { %v1292_v58 = vrot.slane %v1291_v57, 1 }
 0x19d   : > { %vm1293_vm6 = vcmp.lt.s32.totalorder %v1291_v57, %v1292_v58 }
 0x19e   : > { %v1294_v59 = vsel %vm1293_vm6, %v1291_v57, %v1292_v58 }
 0x19f   : > { %5007 = vpush %v1294_v59 }
 0x1ac   : > { %v4831_v60 = vpop.f32.mrf.mxu0 }
 0x1ae   : > { %v4866_v61 = vpop.f32.mrf.mxu1  ;;  %v4832_v62 = vpop.f32.mrf.mxu0 }
 0x1af   : > { %v4833_v63 = vadd.f32 %v4832_v62, %v4831_v60 }
 0x1b0   : > { %v4867_v1 = vpop.f32.mrf.mxu1 }
 0x1b1   : > { %v910_v2 = vadd.f32 %v4833_v63, %v4161_v0  ;;  %v4868_v3 = vadd.f32 %v4867_v1, %v4866_v61 }
 0x1b3   : > { %v980_v7 = vadd.f32 %v4868_v3, %v910_v2  ;;  %v1241_v2 = vmul.f32 %v6188_v37, %v6188_v37  ;;  %v1240_v3 = vmul.f32 %v6190_v39, %v6190_v39 }
 0x1ce   : > { %v4901_v4 = vpop.f32.mrf.mxu0 }
 0x1cf   : > { %v4936_v5 = vpop.f32.mrf.mxu1 }
 0x1d0   : > { %v4902_v6 = vpop.f32.mrf.mxu0  ;;  %s6238_s2 = spop %5007 }
 0x1d1   : > { %v4903_v8 = vadd.f32 %v4902_v6, %v4901_v4  ;;  %v4937_v9 = vpop.f32.mrf.mxu1  ;;  %v1296_v17 = vstv %s6238_s2  ;;  %v1248_v4 = vadd.f32 %v1241_v2, %v1240_v3  ;;  %v1243_v6 = vmul.f32 %v6192_v40, %v6192_v40 }
 0x1d2   : > { %v4938_v15 = vadd.f32 %v4937_v9, %v4936_v5  ;;  %vm1300_vm7 = vcmp.eq.s32.totalorder %v6235_v51, %v1296_v17  ;;  %vm1297_vm13 = vcmp.eq.s32.totalorder %v1275_v43, %v1296_v17  ;;  %v1242_v5 = vmul.f32 %v6195_v45, %v6195_v45 }
 0x1d3   : > { %v1050_v14 = vadd.f32 %v4903_v8, %v980_v7  ;;  %v1301_v19 = vsel %vm1300_vm7, -inf, %v1271_v35  ;;  %v4162_v35 = vld [vmem:[#allocation11] ss:$0 sm:$0xff]  ;;  %v4163_v47 = vsel %vm1297_vm13, 1.0, %v5878_v16  ;;  %v1244_v9 = vmul.f32 %v6204_v12, %v6204_v12 }
 0x1d4   : > { %v1302_v20 = vrot.slane %v1301_v19, 4  ;;  %v1249_v7 = vadd.f32 %v1248_v4, %v1242_v5 }
 0x1d5   : > { %v1120_v18 = vadd.f32 %v4938_v15, %v1050_v14  ;;  %v1245_v14 = vmul.f32 %v6200_v10, %v6200_v10  ;;  %v1246_v15 = vmul.f32 %v6206_v13, %v6206_v13 }
 0x1d6   : > { %v1303_v22 = vmax.f32 %v1301_v19, %v1302_v20  ;;  %v1250_v8 = vadd.f32 %v1249_v7, %v1243_v6 }
 0x1d7   : > { %v1123_v21 = vmax.f32 %v1120_v18, 0.0  ;;  %v1247_v18 = vmul.f32 %v6202_v11, %v6202_v11 }
 0x1d8   : > { %v1304_v23 = vrot.slane %v1303_v22, 2  ;;  %v1251_v17 = vadd.f32 %v1250_v8, %v1244_v9 }
 0x1d9   : > { %4993 = vmatmul.mubr.f32.vlgmr.msra.gmra.mxu0 %v1123_v21 }
 0x1da   : > { %v1305_v24 = vmax.f32 %v1303_v22, %v1304_v23 }
 0x1dc   : > { %v1306_v25 = vrot.slane %v1305_v24, 1 }
 0x1de   : > { %v1307_v26 = vmax.f32 %v1305_v24, %v1306_v25 }
 0x1e0   : > { %5009 = vpush %v1307_v26 }
 0x211   : > { %s5010_s28 = spop %5009 }
 0x212   : > { %v1309_v27 = vstv %s5010_s28 }
 0x213   : > { %vm1310_vm8 = vcmp.eq.f32.partialorder %v1301_v19, %v1309_v27  ;;  %v1252_v19 = vadd.f32 %v1251_v17, %v1245_v14 }
 0x214   : > { %v1311_v28 = vsel %vm1310_vm8, %v6235_v51, 8 }
 0x215   : > { %v1312_v29 = vrot.slane %v1311_v28, 4  ;;  %v1253_v20 = vadd.f32 %v1252_v19, %v1246_v15 }
 0x217   : > { %vm1313_vm9 = vcmp.lt.s32.totalorder %v1311_v28, %v1312_v29  ;;  %v1254_v21 = vadd.f32 %v1253_v20, %v1247_v18 }
 0x218   : > { %v1314_v30 = vsel %vm1313_vm9, %v1311_v28, %v1312_v29 }
 0x219   : > { %v1315_v31 = vrot.slane %v1314_v30, 2 }
 0x21b   : > { %vm1316_vm10 = vcmp.lt.s32.totalorder %v1314_v30, %v1315_v31 }
 0x21c   : > { %v1317_v32 = vsel %vm1316_vm10, %v1314_v30, %v1315_v31 }
 0x21d   : > { %v1318_v33 = vrot.slane %v1317_v32, 1 }
 0x21f   : > { %vm1319_vm11 = vcmp.lt.s32.totalorder %v1317_v32, %v1318_v33 }
 0x220   : > { %v1320_v34 = vsel %vm1319_vm11, %v1317_v32, %v1318_v33 }
 0x221   : > { %5011 = vpush %v1320_v34 }
 0x252   : > { %s5012_s18 = spop %5011 }
 0x253   : > { %v1322_v42 = vstv %s5012_s18 }
 0x254   : > { %vm1323_vm12 = vcmp.eq.s32.totalorder %v1275_v43, %v1322_v42 }
 0x255   : > { %v4164_v44 = vsel %vm1323_vm12, 1.0, %v5878_v16 }
 0x256   : > { %v1327_v48 = vsel %vm1326_vm14, %v4163_v47, %v4164_v44 }
 0x299   : > { %v1229_v36 = vpop.f32.mrf.mxu0 }
 0x29a   : > { %v1230_v38 = vadd.f32 %v4162_v35, %v1229_v36 }
 0x29b   : > { %v4994_v41 = vpop.f32.mrf.mxu0 }
 0x29c   : > { %5146 = vtanh.f32 %v1230_v38 }
 0x2a9   : > { %v5147_v46 = vpop.eup %5146 }
 0x2aa   : > { %4996 = vmatpush3.msra.mxu1 %v5147_v46  ;;  %v1234_v49 = vmul.f32 %v5147_v46, %v5147_v46 }
 0x2ab   : > { %4998 = vmatmul.mubr.msk.f32.vlgmr.msra.gmra.mxu1 %vm1328_vm15, %v1327_v48  ;;  %5000 = vmatprep.subr.mxu1 %v5878_v16 }
 0x2ac   : > { %1235 = vadd.xlane.f32.xlu0 %v1234_v49  ;;  %5002 = vmatprep.mubr.msk.f32.mxu1 %vm5879_vm2, %v5878_v16 }
 0x335   : > { %v1236_v50 = vpop.xlane.xlu0 %1235 }
 0x336   : > { %v1237_v52 = vmax.f32 %v1236_v50, 1e-24 }
 0x338   : > { %5148 = vrsqrt.f32 %v1237_v52 }
 0x345   : > { %v5149_v53 = vpop.eup %5148 }
 0x346   : > { %v1239_v56 = vmul.f32 %v5149_v53, %v5147_v46 }
 0x36b   : > { %v1398_v54 = vpop.f32.mrf.mxu1 }
 0x36c   : > { %5001 = vmatpush3.xpose.msra.mxu1 %v1398_v54 }
 0x36d   : > { %v4999_v55 = vpop.f32.mrf.mxu1 }
 0x36f   : > { %5003 = vmatmul.mubr.f32.vlgmr.msra.gmra.mxu1 %v1239_v56 }
 0x370   : > { %1590 = vmatprep.mubr.f32.mxu1 %v5878_v16 }
 0x42f   : > { %v1468_v57 = vpop.f32.mrf.mxu1 }
 0x430   : > { %v1472_v58 = vmul.f32 %v1468_v57, %v1468_v57 }
 0x431   : > { %v5004_v59 = vpop.f32.mrf.mxu1 }
 0x432   : > { %v1473_v60 = vsel %vm1268_vm0, %v1472_v58, 0.0 }
 0x433   : > { %1474 = vadd.xlane.f32.xlu1 %v1473_v60 }
 0x4bc   : > { %v1475_v61 = vpop.xlane.xlu1 %1474 }
 0x4bd   : > { %v1476_v62 = vmax.f32 %v1475_v61, 1e-24 }
 0x4bf   : > { %5150 = vrsqrt.f32 %v1476_v62 }
 0x4cc   : > { %v5151_v63 = vpop.eup %5150 }
 0x4cd   : > { %v1478_v0 = vmul.f32 %v5151_v63, %v1468_v57 }
 0x4cf   : > { %v1479_v1 = vsel %vm1268_vm0, %v1478_v0, -inf }
 0x4d0   : > { %1480 = vmax.xlane.f32.xlu1 %v1479_v1 }
 0x4d4   : > { %1255 = vadd.xlane.f32.xlu1 %v1254_v21 }
 0x559   : > { %v1481_v22 = vpop.xlane.xlu1 %1480 }
 0x55a   : > { %v1482_v23 = vsub.f32 %v1478_v0, %v1481_v22 }
 0x55c   : > { %v1483_v24 = vmul.f32 1.442695, %v1482_v23 }
 0x55d   : > { %v1256_v27 = vpop.xlane.xlu1 %1255 }
 0x55e   : > { %5152 = vpow2.f32 %v1483_v24  ;;  %v1257_v28 = vmax.f32 %v1256_v27, 1e-24 }
 0x560   : > { %5154 = vrsqrt.f32 %v1257_v28 }
 0x56b   : > { %v5153_v25 = vpop.eup %5152 }
 0x56c   : > { %v1485_v26 = vsel %vm1268_vm0, %v5153_v25, 0.0 }
 0x56d   : > { %1486 = vadd.xlane.f32.xlu0 %v1485_v26  ;;  %v5155_v29 = vpop.eup %5154 }
 0x56e   : > { %v1260_v30 = vmul.f32 %v5155_v29, %v6188_v37  ;;  %v1259_v31 = vmul.f32 %v5155_v29, %v6190_v39  ;;  %v1262_v32 = vmul.f32 %v5155_v29, %v6192_v40  ;;  %v1261_v37 = vmul.f32 %v5155_v29, %v6195_v45 }
 0x56f   : > { %v1264_v39 = vmul.f32 %v5155_v29, %v6200_v10  ;;  %v1263_v40 = vmul.f32 %v5155_v29, %v6204_v12  ;;  %v1266_v38 = vmul.f32 %v5155_v29, %v6202_v11  ;;  %v1265_v45 = vmul.f32 %v5155_v29, %v6206_v13 }
 0x570   : > { %1556 = vmatprep.subr.mxu1 %v1260_v30  ;;  %v5880_v12 = vmov 1966171168  }
 0x571   : > { %1557 = vmatpush1.msra.mxu1 %v1259_v31  ;;  %v1831_v42 = vunpack.c.l.s4 %v5880_v12 }
 0x572   : > { %1627 = vmatprep.subr.mxu1 %v1262_v32 }
 0x573   : > { %v1832_v11 = vunpack.c.0.s8 %v1831_v42 }
 0x575   : > { %v1835_v49 = vsub.s32 %v1832_v11, %v6235_v51 }
 0x5f6   : > { %v1487_v33 = vpop.xlane.xlu0 %1486 }
 0x5f7   : > { %5156 = vrcp.f32 %v1487_v33 }
 0x604   : > { %v5157_v34 = vpop.eup %5156 }
 0x605   : > { %v1489_v35 = vmul.f32 %v5157_v34, %v5153_v25 }
 0x607   : > { %1491 = vxpose.xlu0.b32.start.end [1/1] (short) (narrow) %v1489_v35, 8  ;;  %1490 = vst.msk [vmem:[%s6671_s11] sm:$0xff] %vm1268_vm0, %v1489_v35 }
 0x683   : > { %v1507_v36 = vpop.trf.xlu0 }
 0x684   : > { %4166 = vmatmul.mubr.msk.f32.vlgmr.msra.gmra.mxu1 %vm1328_vm15, %v1507_v36 }
 0x685   : > { %1628 = vmatpush1.msra.mxu1 %v1261_v37  ;;  %1661 = vmatprep.mubr.f32.mxu1 %v5878_v16 }
 0x686   : > { %1698 = vmatprep.subr.mxu1 %v1264_v39 }
 0x688   : > { %4167 = vmatmul.mubr.msk.f32.vlgmr.msra.gmra.mxu1 %vm1328_vm15, %v1507_v36 }
 0x689   : > { %1699 = vmatpush1.msra.mxu1 %v1263_v40  ;;  %1732 = vmatprep.mubr.f32.mxu1 %v5878_v16 }
 0x68a   : > { %1769 = vmatprep.subr.mxu1 %v1266_v38 }
 0x68c   : > { %4168 = vmatmul.mubr.msk.f32.vlgmr.msra.gmra.mxu1 %vm1328_vm15, %v1507_v36 }
 0x68d   : > { %1770 = vmatpush1.msra.mxu1 %v1265_v45  ;;  %1803 = vmatprep.mubr.f32.mxu1 %v5878_v16 }
 0x690   : > { %4169 = vmatmul.mubr.msk.f32.vlgmr.msra.gmra.mxu1 %vm1328_vm15, %v1507_v36 }
 0x744   : > { %v1592_v10 = vpop.f32.mrf.mxu1 }
 0x746   : > { %v1594_v41 = vpop.f32.mrf.mxu1 }
 0x747   : > { %v4170_v13 = vpack.c.bf16 %v1594_v41, %v1592_v10 }
 0x748   : > { %v1663_v43 = vpop.f32.mrf.mxu1 }
 0x749   : > { %v1836_v16 = vrot.slane %v4170_v13, %v1835_v49 }
 0x74a   : > { %v1665_v44 = vpop.f32.mrf.mxu1 }
 0x74b   : > { %v4171_v47 = vpack.c.bf16 %v1665_v44, %v1663_v43 }
 0x74c   : > { %v1734_v46 = vpop.f32.mrf.mxu1 }
 0x74d   : > { %v1843_v52 = vrot.slane %v4171_v47, %v1835_v49 }
 0x74e   : > { %v1736_v48 = vpop.f32.mrf.mxu1 }
 0x74f   : > { %v4172_v53 = vpack.c.bf16 %v1736_v48, %v1734_v46  ;;  %v1858_v56 = vcombine.low %v1836_v16, %v1843_v52 }
 0x750   : > { %v1805_v50 = vpop.f32.mrf.mxu1 }
 0x751   : > { %v1850_v57 = vrot.slane %v4172_v53, %v1835_v49  ;;  %v1866_v60 = vrot.slane %v1858_v56, %v1835_v49 }
 0x752   : > { %v1807_v54 = vpop.f32.mrf.mxu1 }
 0x753   : > { %v4173_v55 = vpack.c.bf16 %v1807_v54, %v1805_v50 }
 0x755   : > { %v1857_v58 = vrot.slane %v4173_v55, %v1835_v49 }
 0x757   : > { %v1859_v59 = vcombine.low %v1850_v57, %v1857_v58 }
 0x759   : > { %v1873_v61 = vrot.slane %v1859_v59, %v1835_v49 }
 0x75b   : > { %v1874_v62 = vcombine.low %v1866_v60, %v1873_v61 }
 0x75d   : > { %1876 = vst [vmem:[#allocation2] sm:$0xff] %v1874_v62 }
 0x75e PF: > { %v5158_v51 = vld [vmem:[%s6160_s14 + $0xe4] ss:$16 sps:$4 sm:$0xff]   ;;  %v5162_v0 = vld [vmem:[%s6160_s14 + $0xe0] ss:$16 sps:$4 sm:$0xff]   ;;  %v2138_v40 = vlaneseq  ;;  %v5881_v38 = vmov 1966171168  }
 0x75f   : > { %v5160_v63 = vld [vmem:[%s6160_s14 + $0x2e4] ss:$16 sps:$4 sm:$0xff]   ;;  %3496 = vmatprep.subr.bf16.mxu0 %v5158_v51  ;;  %v5163_v1 = vld [vmem:[%s6160_s14 + $0x2e0] ss:$16 sps:$4 sm:$0xff]   ;;  %v2161_v45 = vunpack.c.l.s4 %v5881_v38  ;;  %vm3859_vm0 = vcmask 1041408   ;;  %vm3913_vm1 = vcmask 7168  }
 0x760   : > { %3537 = vmatprep.subr.bf16.mxu1 %v5160_v63  ;;  %v5164_v2 = vld [vmem:[%s6160_s14 + $0xc4] ss:$16 sps:$4 sm:$0xff]   ;;  %3497 = vmatpush1.bf16.msra.mxu0 %v5162_v0  ;;  %v5168_v4 = vld [vmem:[%s6160_s14 + $0xc0] ss:$16 sps:$4 sm:$0xff]   ;;  %v6329_v42 = vshrl.u32 %v2138_v40, 7  ;;  %vm3916_vm2 = vcmask 8192  }
 0x761   : > { %3538 = vmatpush1.bf16.msra.mxu1 %v5163_v1  ;;  %v5166_v3 = vld [vmem:[%s6160_s14 + $0x2c4] ss:$16 sps:$4 sm:$0xff]   ;;  %3498 = vmatprep.subr.bf16.mxu0 %v5164_v2  ;;  %v5169_v5 = vld [vmem:[%s6160_s14 + $0x2c0] ss:$16 sps:$4 sm:$0xff]   ;;  %v2162_v43 = vunpack.c.0.s8 %v2161_v45  ;;  %p4430_p11 = scmp.ne.s32.totalorder %s5971_s27, 1 }
 0x762   : > { %3539 = vmatprep.subr.bf16.mxu1 %v5166_v3  ;;  %v5170_v6 = vld [vmem:[%s6160_s14 + $0xa4] ss:$16 sps:$4 sm:$0xff]   ;;  %v5174_v8 = vld [vmem:[%s6160_s14 + $0xa0] ss:$16 sps:$4 sm:$0xff]  }
 0x763   : > { %v5172_v7 = vld [vmem:[%s6160_s14 + $0x2a4] ss:$16 sps:$4 sm:$0xff]   ;;  %v5175_v9 = vld [vmem:[%s6160_s14 + $0x2a0] ss:$16 sps:$4 sm:$0xff]   ;;  %v2165_v49 = vsub.s32 %v2162_v43, %v6329_v42 }
 0x764   : > { %3499 = vmatpush1.bf16.msra.mxu0 %v5168_v4  ;;  %v5176_v14 = vld [vmem:[%s6160_s14 + $0x84] ss:$16 sps:$4 sm:$0xff]   ;;  %v5180_v17 = vld [vmem:[%s6160_s14 + $0x80] ss:$16 sps:$4 sm:$0xff]  }
 0x765   : > { %3540 = vmatpush1.bf16.msra.mxu1 %v5169_v5  ;;  %3500 = vmatprep.subr.bf16.mxu0 %v5170_v6  ;;  %v5178_v15 = vld [vmem:[%s6160_s14 + $0x284] ss:$16 sps:$4 sm:$0xff]   ;;  %v5181_v18 = vld [vmem:[%s6160_s14 + $0x280] ss:$16 sps:$4 sm:$0xff]  }
 0x766   : > { %3541 = vmatprep.subr.bf16.mxu1 %v5172_v7  ;;  %v5182_v19 = vld [vmem:[%s6160_s14 + $0x64] ss:$16 sps:$4 sm:$0xff]   ;;  %v5186_v21 = vld [vmem:[%s6160_s14 + $0x60] ss:$16 sps:$4 sm:$0xff]  }
 0x767   : > { %v5184_v20 = vld [vmem:[%s6160_s14 + $0x264] ss:$16 sps:$4 sm:$0xff]   ;;  %v5187_v22 = vld [vmem:[%s6160_s14 + $0x260] ss:$16 sps:$4 sm:$0xff]  }
 0x768   : > { %3501 = vmatpush1.bf16.msra.mxu0 %v5174_v8  ;;  %v5188_v23 = vld [vmem:[%s6160_s14 + $0x44] ss:$16 sps:$4 sm:$0xff]   ;;  %v5192_v25 = vld [vmem:[%s6160_s14 + $0x40] ss:$16 sps:$4 sm:$0xff]  }
 0x769   : > { %3542 = vmatpush1.bf16.msra.mxu1 %v5175_v9  ;;  %3502 = vmatprep.subr.bf16.mxu0 %v5176_v14  ;;  %v5190_v24 = vld [vmem:[%s6160_s14 + $0x244] ss:$16 sps:$4 sm:$0xff]   ;;  %v5193_v26 = vld [vmem:[%s6160_s14 + $0x240] ss:$16 sps:$4 sm:$0xff]  }
 0x76a   : > { %3543 = vmatprep.subr.bf16.mxu1 %v5178_v15  ;;  %v5194_v27 = vld [vmem:[%s6160_s14 + $0x24] ss:$16 sps:$4 sm:$0xff]   ;;  %v5198_v29 = vld [vmem:[%s6160_s14 + $0x20] ss:$16 sps:$4 sm:$0xff]  }
 0x76b   : > { %v5196_v28 = vld [vmem:[%s6160_s14 + $0x224] ss:$16 sps:$4 sm:$0xff]   ;;  %v5199_v30 = vld [vmem:[%s6160_s14 + $0x220] ss:$16 sps:$4 sm:$0xff]  }
 0x76c   : > { %3503 = vmatpush1.bf16.msra.mxu0 %v5180_v17  ;;  %v5200_v31 = vld [vmem:[%s6160_s14 + $0x4] ss:$16 sps:$4 sm:$0xff]   ;;  %v5204_v33 = vld [vmem:[%s6160_s14] ss:$16 sps:$4 sm:$0xff]  }
 0x76d   : > { %3544 = vmatpush1.bf16.msra.mxu1 %v5181_v18  ;;  %3504 = vmatprep.subr.bf16.mxu0 %v5182_v19  ;;  %v5202_v32 = vld [vmem:[%s6160_s14 + $0x204] ss:$16 sps:$4 sm:$0xff]   ;;  %v5205_v34 = vld [vmem:[%s6160_s14 + $0x200] ss:$16 sps:$4 sm:$0xff]  }
 0x76e   : > { %3545 = vmatprep.subr.bf16.mxu1 %v5184_v20  ;;  %v5206_v35 = vld [vmem:[%s6160_s14 + $0x1e4] ss:$16 sps:$4 sm:$0xff]   ;;  %v5210_v37 = vld [vmem:[%s6160_s14 + $0x1e0] ss:$16 sps:$4 sm:$0xff]  }
 0x76f   : > { %v5208_v36 = vld [vmem:[%s6160_s14 + $0x3e4] ss:$16 sps:$4 sm:$0xff]   ;;  %v5211_v39 = vld [vmem:[%s6160_s14 + $0x3e0] ss:$16 sps:$4 sm:$0xff]  }
 0x770   : > { %3505 = vmatpush1.bf16.msra.mxu0 %v5186_v21  ;;  %v5212_v10 = vld [vmem:[%s6160_s14 + $0x1c4] ss:$16 sps:$4 sm:$0xff]   ;;  %v5216_v12 = vld [vmem:[%s6160_s14 + $0x1c0] ss:$16 sps:$4 sm:$0xff]  }
 0x771   : > { %3546 = vmatpush1.bf16.msra.mxu1 %v5187_v22  ;;  %3506 = vmatprep.subr.bf16.mxu0 %v5188_v23  ;;  %v5214_v41 = vld [vmem:[%s6160_s14 + $0x3c4] ss:$16 sps:$4 sm:$0xff]   ;;  %v5217_v44 = vld [vmem:[%s6160_s14 + $0x3c0] ss:$16 sps:$4 sm:$0xff]  }
 0x772   : > { %3547 = vmatprep.subr.bf16.mxu1 %v5190_v24  ;;  %v5218_v11 = vld [vmem:[%s6160_s14 + $0x1a4] ss:$16 sps:$4 sm:$0xff]   ;;  %v5222_v47 = vld [vmem:[%s6160_s14 + $0x1a0] ss:$16 sps:$4 sm:$0xff]  }
 0x773   : > { %v5220_v46 = vld [vmem:[%s6160_s14 + $0x3a4] ss:$16 sps:$4 sm:$0xff]   ;;  %v5223_v48 = vld [vmem:[%s6160_s14 + $0x3a0] ss:$16 sps:$4 sm:$0xff]  }
 0x774   : > { %3507 = vmatpush1.bf16.msra.mxu0 %v5192_v25  ;;  %v5224_v13 = vld [vmem:[%s6160_s14 + $0x184] ss:$16 sps:$4 sm:$0xff]   ;;  %v5228_v53 = vld [vmem:[%s6160_s14 + $0x180] ss:$16 sps:$4 sm:$0xff]  }
 0x775   : > { %3548 = vmatpush1.bf16.msra.mxu1 %v5193_v26  ;;  %3508 = vmatprep.subr.bf16.mxu0 %v5194_v27  ;;  %v5226_v50 = vld [vmem:[%s6160_s14 + $0x384] ss:$16 sps:$4 sm:$0xff]   ;;  %v5229_v55 = vld [vmem:[%s6160_s14 + $0x380] ss:$16 sps:$4 sm:$0xff]  }
 0x776   : > { %3549 = vmatprep.subr.bf16.mxu1 %v5196_v28  ;;  %v1879_v52 = vld [vmem:[#allocation2] sm:$0xff]  ;;  %v5234_v60 = vld [vmem:[%s6160_s14 + $0x160] ss:$16 sps:$4 sm:$0xff]  }
 0x777   : > { %v2166_v54 = vrot.slane %v1879_v52, %v2165_v49  ;;  %v2159_v16 = vcombine.high %v1879_v52, %v1879_v52  ;;  %v5230_v56 = vld [vmem:[%s6160_s14 + $0x164] ss:$16 sps:$4 sm:$0xff]   ;;  %v5235_v51 = vld [vmem:[%s6160_s14 + $0x360] ss:$16 sps:$4 sm:$0xff]  }
 0x778   : > { %3509 = vmatpush1.bf16.msra.mxu0 %v5198_v29  ;;  %v5232_v57 = vld [vmem:[%s6160_s14 + $0x364] ss:$16 sps:$4 sm:$0xff]   ;;  %v5240_v2 = vld [vmem:[%s6160_s14 + $0x140] ss:$16 sps:$4 sm:$0xff]  }
 0x779   : > { %3550 = vmatpush1.bf16.msra.mxu1 %v5199_v30  ;;  %3510 = vmatprep.subr.bf16.mxu0 %v5200_v31  ;;  %v2174_v58 = vcombine.high %v2166_v54, %v2166_v54  ;;  %v2173_v59 = vrot.slane %v2159_v16, %v2165_v49  ;;  %v5236_v63 = vld [vmem:[%s6160_s14 + $0x144] ss:$16 sps:$4 sm:$0xff]   ;;  %v5241_v3 = vld [vmem:[%s6160_s14 + $0x340] ss:$16 sps:$4 sm:$0xff]   ;;  %v6366_v17 = vrot.slane %v2166_v54, %v2165_v49 }
 0x77a   : > { %3551 = vmatprep.subr.bf16.mxu1 %v5202_v32  ;;  %v5238_v0 = vld [vmem:[%s6160_s14 + $0x344] ss:$16 sps:$4 sm:$0xff]   ;;  %v5246_v6 = vld [vmem:[%s6160_s14 + $0x120] ss:$16 sps:$4 sm:$0xff]  }
 0x77b   : > { %v6344_v61 = vrot.slane %v2174_v58, %v2165_v49  ;;  %v6346_v62 = vrot.slane %v2173_v59, %v2165_v49  ;;  %v5242_v4 = vld [vmem:[%s6160_s14 + $0x124] ss:$16 sps:$4 sm:$0xff]   ;;  %v5247_v7 = vld [vmem:[%s6160_s14 + $0x320] ss:$16 sps:$4 sm:$0xff]   ;;  %v2175_v14 = vcombine.high %v2173_v59, %v2173_v59  ;;  %v6375_v22 = vcombine.high %v6366_v17, %v6366_v17 }
 0x77c   : > { %3511 = vmatpush1.bf16.msra.mxu0 %v5204_v33  ;;  %v5244_v5 = vld [vmem:[%s6160_s14 + $0x324] ss:$16 sps:$4 sm:$0xff]   ;;  %v5252_v15 = vld [vmem:[%s6160_s14 + $0x100] ss:$16 sps:$4 sm:$0xff]  }
 0x77d   : > { %3552 = vmatpush1.bf16.msra.mxu1 %v5205_v34  ;;  %3512 = vmatprep.subr.bf16.mxu0 %v5206_v35  ;;  %v6353_v1 = vcombine.high %v6344_v61, %v6344_v61  ;;  %v5248_v8 = vld [vmem:[%s6160_s14 + $0x104] ss:$16 sps:$4 sm:$0xff]   ;;  %v5253_v18 = vld [vmem:[%s6160_s14 + $0x300] ss:$16 sps:$4 sm:$0xff]   ;;  %v6371_v21 = vrot.slane %v2175_v14, %v2165_v49 }
 0x77e   : > { %3553 = vmatprep.subr.bf16.mxu1 %v5208_v36  ;;  %3528 = vmatprep.mubr.bf16.mxu0 %v6344_v61  ;;  %v5250_v9 = vld [vmem:[%s6160_s14 + $0x304] ss:$16 sps:$4 sm:$0xff]   ;;  %v5254_v23 = vld [vmem:[%s6160_s14 + $0x4e0] ss:$16 sps:$4 sm:$0xff]  }
 0x77f   : > { %3569 = vmatprep.mubr.bf16.mxu1 %v6353_v1  ;;  %v5256_v19 = vld [vmem:[%s6160_s14 + $0x4e4] ss:$16 sps:$4 sm:$0xff]   ;;  %v5257_v24 = vld [vmem:[%s6160_s14 + $0x6e0] ss:$16 sps:$4 sm:$0xff]   ;;  %v6383_v27 = vcombine.high %v6371_v21, %v6371_v21 }
 0x780   : > { %3513 = vmatpush2.bf16.msra.mxu0 %v5210_v37  ;;  %v5259_v20 = vld [vmem:[%s6160_s14 + $0x6e4] ss:$16 sps:$4 sm:$0xff]   ;;  %v5260_v28 = vld [vmem:[%s6160_s14 + $0x4c0] ss:$16 sps:$4 sm:$0xff]  }
 0x781   : > { %3554 = vmatpush2.bf16.msra.mxu1 %v5211_v39  ;;  %3514 = vmatprep.subr.bf16.mxu0 %v5212_v10  ;;  %v5262_v25 = vld [vmem:[%s6160_s14 + $0x4c4] ss:$16 sps:$4 sm:$0xff]   ;;  %v5263_v29 = vld [vmem:[%s6160_s14 + $0x6c0] ss:$16 sps:$4 sm:$0xff]  }
 0x782   : > { %3555 = vmatprep.subr.bf16.mxu1 %v5214_v41  ;;  %v5265_v26 = vld [vmem:[%s6160_s14 + $0x6c4] ss:$16 sps:$4 sm:$0xff]   ;;  %v5266_v32 = vld [vmem:[%s6160_s14 + $0x4a0] ss:$16 sps:$4 sm:$0xff]  }
 0x783   : > { %v5268_v30 = vld [vmem:[%s6160_s14 + $0x4a4] ss:$16 sps:$4 sm:$0xff]   ;;  %v5269_v33 = vld [vmem:[%s6160_s14 + $0x6a0] ss:$16 sps:$4 sm:$0xff]  }
 0x784   : > { %3515 = vmatpush2.bf16.msra.mxu0 %v5216_v12  ;;  %v5271_v31 = vld [vmem:[%s6160_s14 + $0x6a4] ss:$16 sps:$4 sm:$0xff]   ;;  %v5272_v36 = vld [vmem:[%s6160_s14 + $0x480] ss:$16 sps:$4 sm:$0xff]  }
 0x785   : > { %3556 = vmatpush2.bf16.msra.mxu1 %v5217_v44  ;;  %3516 = vmatprep.subr.bf16.mxu0 %v5218_v11  ;;  %v5274_v34 = vld [vmem:[%s6160_s14 + $0x484] ss:$16 sps:$4 sm:$0xff]   ;;  %v5275_v37 = vld [vmem:[%s6160_s14 + $0x680] ss:$16 sps:$4 sm:$0xff]  }
 0x786   : > { %3557 = vmatprep.subr.bf16.mxu1 %v5220_v46  ;;  %v5277_v35 = vld [vmem:[%s6160_s14 + $0x684] ss:$16 sps:$4 sm:$0xff]   ;;  %v5278_v38 = vld [vmem:[%s6160_s14 + $0x460] ss:$16 sps:$4 sm:$0xff]  }
 0x787   : > { %v5280_v39 = vld [vmem:[%s6160_s14 + $0x464] ss:$16 sps:$4 sm:$0xff]   ;;  %v5281_v45 = vld [vmem:[%s6160_s14 + $0x660] ss:$16 sps:$4 sm:$0xff]  }
 0x788   : > { %3517 = vmatpush2.bf16.msra.mxu0 %v5222_v47  ;;  %v5283_v40 = vld [vmem:[%s6160_s14 + $0x664] ss:$16 sps:$4 sm:$0xff]   ;;  %v5284_v12 = vld [vmem:[%s6160_s14 + $0x440] ss:$16 sps:$4 sm:$0xff]  }
 0x789   : > { %3558 = vmatpush2.bf16.msra.mxu1 %v5223_v48  ;;  %3518 = vmatprep.subr.bf16.mxu0 %v5224_v13  ;;  %v5286_v10 = vld [vmem:[%s6160_s14 + $0x444] ss:$16 sps:$4 sm:$0xff]   ;;  %v5287_v43 = vld [vmem:[%s6160_s14 + $0x640] ss:$16 sps:$4 sm:$0xff]  }
 0x78a   : > { %3559 = vmatprep.subr.bf16.mxu1 %v5226_v50  ;;  %v5289_v41 = vld [vmem:[%s6160_s14 + $0x644] ss:$16 sps:$4 sm:$0xff]   ;;  %v5290_v46 = vld [vmem:[%s6160_s14 + $0x420] ss:$16 sps:$4 sm:$0xff]  }
 0x78b   : > { %v5292_v44 = vld [vmem:[%s6160_s14 + $0x424] ss:$16 sps:$4 sm:$0xff]   ;;  %v5293_v47 = vld [vmem:[%s6160_s14 + $0x620] ss:$16 sps:$4 sm:$0xff]  }
 0x78c   : > { %3519 = vmatpush2.bf16.msra.mxu0 %v5228_v53  ;;  %v5295_v11 = vld [vmem:[%s6160_s14 + $0x624] ss:$16 sps:$4 sm:$0xff]   ;;  %v5296_v13 = vld [vmem:[%s6160_s14 + $0x400] ss:$16 sps:$4 sm:$0xff]  }
 0x78d   : > { %3560 = vmatpush2.bf16.msra.mxu1 %v5229_v55  ;;  %3520 = vmatprep.subr.bf16.mxu0 %v5230_v56  ;;  %v5298_v48 = vld [vmem:[%s6160_s14 + $0x404] ss:$16 sps:$4 sm:$0xff]   ;;  %v5299_v50 = vld [vmem:[%s6160_s14 + $0x600] ss:$16 sps:$4 sm:$0xff]  }
 0x78e   : > { %3561 = vmatprep.subr.bf16.mxu1 %v5232_v57  ;;  %v5301_v49 = vld [vmem:[%s6160_s14 + $0x604] ss:$16 sps:$4 sm:$0xff]   ;;  %v5302_v54 = vld [vmem:[%s6160_s14 + $0x5e0] ss:$16 sps:$4 sm:$0xff]  }
 0x78f   : > { %v5304_v52 = vld [vmem:[%s6160_s14 + $0x5e4] ss:$16 sps:$4 sm:$0xff]   ;;  %v5305_v16 = vld [vmem:[%s6160_s14 + $0x7e0] ss:$16 sps:$4 sm:$0xff]  }
 0x790   : > { %3521 = vmatpush2.bf16.msra.mxu0 %v5234_v60  ;;  %v5307_v53 = vld [vmem:[%s6160_s14 + $0x7e4] ss:$16 sps:$4 sm:$0xff]   ;;  %v5308_v57 = vld [vmem:[%s6160_s14 + $0x5c0] ss:$16 sps:$4 sm:$0xff]  }
 0x791   : > { %3562 = vmatpush2.bf16.msra.mxu1 %v5235_v51  ;;  %3522 = vmatprep.subr.bf16.mxu0 %v5236_v63  ;;  %v5310_v55 = vld [vmem:[%s6160_s14 + $0x5c4] ss:$16 sps:$4 sm:$0xff]   ;;  %v5311_v58 = vld [vmem:[%s6160_s14 + $0x7c0] ss:$16 sps:$4 sm:$0xff]  }
 0x792   : > { %3563 = vmatprep.subr.bf16.mxu1 %v5238_v0  ;;  %v5313_v56 = vld [vmem:[%s6160_s14 + $0x7c4] ss:$16 sps:$4 sm:$0xff]   ;;  %v5314_v51 = vld [vmem:[%s6160_s14 + $0x5a0] ss:$16 sps:$4 sm:$0xff]  }
 0x793   : > { %v5316_v59 = vld [vmem:[%s6160_s14 + $0x5a4] ss:$16 sps:$4 sm:$0xff]   ;;  %v5317_v63 = vld [vmem:[%s6160_s14 + $0x7a0] ss:$16 sps:$4 sm:$0xff]  }
 0x794   : > { %3523 = vmatpush2.bf16.msra.mxu0 %v5240_v2  ;;  %v5319_v60 = vld [vmem:[%s6160_s14 + $0x7a4] ss:$16 sps:$4 sm:$0xff]  }
 0x795   : > { %3564 = vmatpush2.bf16.msra.mxu1 %v5241_v3  ;;  %3524 = vmatprep.subr.bf16.mxu0 %v5242_v4  ;;  %v5322_v0 = vld [vmem:[%s6160_s14 + $0x584] ss:$16 sps:$4 sm:$0xff]   ;;  %v5320_v3 = vld [vmem:[%s6160_s14 + $0x580] ss:$16 sps:$4 sm:$0xff]  }
 0x796   : > { %3565 = vmatprep.subr.bf16.mxu1 %v5244_v5  ;;  %v5325_v2 = vld [vmem:[%s6160_s14 + $0x784] ss:$16 sps:$4 sm:$0xff]   ;;  %v5323_v4 = vld [vmem:[%s6160_s14 + $0x780] ss:$16 sps:$4 sm:$0xff]  }
 0x797   : > { %v5328_v5 = vld [vmem:[%s6160_s14 + $0x564] ss:$16 sps:$4 sm:$0xff]  }
 0x798   : > { %3525 = vmatpush2.bf16.msra.mxu0 %v5246_v6  ;;  %v5331_v6 = vld [vmem:[%s6160_s14 + $0x764] ss:$16 sps:$4 sm:$0xff]  }
 0x799   : > { %3566 = vmatpush2.bf16.msra.mxu1 %v5247_v7  ;;  %3526 = vmatprep.subr.bf16.mxu0 %v5248_v8  ;;  %v5326_v7 = vld [vmem:[%s6160_s14 + $0x560] ss:$16 sps:$4 sm:$0xff]   ;;  %v5337_v14 = vld [vmem:[%s6160_s14 + $0x744] ss:$16 sps:$4 sm:$0xff]  }
 0x79a   : > { %3567 = vmatprep.subr.bf16.mxu1 %v5250_v9  ;;  %v5329_v8 = vld [vmem:[%s6160_s14 + $0x760] ss:$16 sps:$4 sm:$0xff]   ;;  %v5334_v9 = vld [vmem:[%s6160_s14 + $0x544] ss:$16 sps:$4 sm:$0xff]  }
 0x79c   : > { %3527 = vmatpush2.bf16.msra.mxu0 %v5252_v15  ;;  %v5332_v15 = vld [vmem:[%s6160_s14 + $0x540] ss:$16 sps:$4 sm:$0xff]  }
 0x79d   : > { %3568 = vmatpush2.bf16.msra.mxu1 %v5253_v18  ;;  %3578 = vmatprep.subr.bf16.mxu0 %v5256_v19  ;;  %v5335_v18 = vld [vmem:[%s6160_s14 + $0x740] ss:$16 sps:$4 sm:$0xff]   ;;  %v5340_v19 = vld [vmem:[%s6160_s14 + $0x524] ss:$16 sps:$4 sm:$0xff]  }
 0x79e   : > { %3619 = vmatprep.subr.bf16.mxu1 %v5259_v20  ;;  %v5343_v20 = vld [vmem:[%s6160_s14 + $0x724] ss:$16 sps:$4 sm:$0xff]  }
 0x79f   : > { %3529 = vmatmul.mubr.bf16.vlgmr.msra.gmra.mxu0 %v6366_v17 }
 0x7a0   : > { %3570 = vmatmul.mubr.bf16.vlgmr.msra.gmra.mxu1 %v6375_v22  ;;  %3579 = vmatpush1.bf16.msra.mxu0 %v5254_v23  ;;  %v5338_v23 = vld [vmem:[%s6160_s14 + $0x520] ss:$16 sps:$4 sm:$0xff]  }
 0x7a1   : > { %3620 = vmatpush1.bf16.msra.mxu1 %v5257_v24  ;;  %3580 = vmatprep.subr.bf16.mxu0 %v5262_v25  ;;  %v5341_v24 = vld [vmem:[%s6160_s14 + $0x720] ss:$16 sps:$4 sm:$0xff]   ;;  %v5346_v25 = vld [vmem:[%s6160_s14 + $0x504] ss:$16 sps:$4 sm:$0xff]  }
 0x7a2   : > { %3621 = vmatprep.subr.bf16.mxu1 %v5265_v26  ;;  %3610 = vmatprep.mubr.bf16.mxu0 %v6371_v21  ;;  %v5349_v26 = vld [vmem:[%s6160_s14 + $0x704] ss:$16 sps:$4 sm:$0xff]  }
 0x7a3   : > { %3651 = vmatprep.mubr.bf16.mxu1 %v6383_v27 }
 0x7a4   : > { %3581 = vmatpush1.bf16.msra.mxu0 %v5260_v28  ;;  %v5344_v28 = vld [vmem:[%s6160_s14 + $0x500] ss:$16 sps:$4 sm:$0xff]  }
 0x7a5   : > { %3622 = vmatpush1.bf16.msra.mxu1 %v5263_v29  ;;  %3582 = vmatprep.subr.bf16.mxu0 %v5268_v30  ;;  %v5347_v29 = vld [vmem:[%s6160_s14 + $0x700] ss:$16 sps:$4 sm:$0xff]   ;;  %v5353_v30 = vld [vmem:[%s6160_s14 + $0xec] ss:$16 sps:$4 sm:$0xff]  }
 0x7a6   : > { %3623 = vmatprep.subr.bf16.mxu1 %v5271_v31  ;;  %v5356_v31 = vld [vmem:[%s6160_s14 + $0x2ec] ss:$16 sps:$4 sm:$0xff]  }
 0x7a8   : > { %3583 = vmatpush1.bf16.msra.mxu0 %v5266_v32  ;;  %v6451_v32 = vcombine.high %v6346_v62, %v6346_v62 }
 0x7a9   : > { %3624 = vmatpush1.bf16.msra.mxu1 %v5269_v33  ;;  %3584 = vmatprep.subr.bf16.mxu0 %v5274_v34  ;;  %v5351_v33 = vld [vmem:[%s6160_s14 + $0xe8] ss:$16 sps:$4 sm:$0xff]  }
 0x7aa   : > { %3625 = vmatprep.subr.bf16.mxu1 %v5277_v35  ;;  %v5354_v34 = vld [vmem:[%s6160_s14 + $0x2e8] ss:$16 sps:$4 sm:$0xff]   ;;  %v5359_v35 = vld [vmem:[%s6160_s14 + $0xcc] ss:$16 sps:$4 sm:$0xff]  }
 0x7ac   : > { %3585 = vmatpush1.bf16.msra.mxu0 %v5272_v36  ;;  %v5362_v36 = vld [vmem:[%s6160_s14 + $0x2cc] ss:$16 sps:$4 sm:$0xff]  }
 0x7ad   : > { %3626 = vmatpush1.bf16.msra.mxu1 %v5275_v37  ;;  %3586 = vmatprep.subr.bf16.mxu0 %v5280_v39  ;;  %v5357_v37 = vld [vmem:[%s6160_s14 + $0xc8] ss:$16 sps:$4 sm:$0xff]  }
 0x7ae   : > { %3627 = vmatprep.subr.bf16.mxu1 %v5283_v40  ;;  %v5360_v39 = vld [vmem:[%s6160_s14 + $0x2c8] ss:$16 sps:$4 sm:$0xff]   ;;  %v5365_v40 = vld [vmem:[%s6160_s14 + $0xac] ss:$16 sps:$4 sm:$0xff]  }
 0x7b0   : > { %3587 = vmatpush1.bf16.msra.mxu0 %v5278_v38  ;;  %v5368_v38 = vld [vmem:[%s6160_s14 + $0x2ac] ss:$16 sps:$4 sm:$0xff]  }
 0x7b1   : > { %3628 = vmatpush1.bf16.msra.mxu1 %v5281_v45  ;;  %3588 = vmatprep.subr.bf16.mxu0 %v5286_v10  ;;  %v5363_v45 = vld [vmem:[%s6160_s14 + $0xa8] ss:$16 sps:$4 sm:$0xff]  }
 0x7b2   : > { %3629 = vmatprep.subr.bf16.mxu1 %v5289_v41  ;;  %v5366_v10 = vld [vmem:[%s6160_s14 + $0x2a8] ss:$16 sps:$4 sm:$0xff]   ;;  %v5371_v41 = vld [vmem:[%s6160_s14 + $0x8c] ss:$16 sps:$4 sm:$0xff]  }
 0x7b4   : > { %3589 = vmatpush1.bf16.msra.mxu0 %v5284_v12  ;;  %v5374_v12 = vld [vmem:[%s6160_s14 + $0x28c] ss:$16 sps:$4 sm:$0xff]  }
 0x7b5   : > { %3630 = vmatpush1.bf16.msra.mxu1 %v5287_v43  ;;  %3590 = vmatprep.subr.bf16.mxu0 %v5292_v44  ;;  %v5369_v43 = vld [vmem:[%s6160_s14 + $0x88] ss:$16 sps:$4 sm:$0xff]   ;;  %v5380_v44 = vld [vmem:[%s6160_s14 + $0x26c] ss:$16 sps:$4 sm:$0xff]  }
 0x7b6   : > { %3631 = vmatprep.subr.bf16.mxu1 %v5295_v11  ;;  %v5375_v11 = vld [vmem:[%s6160_s14 + $0x68] ss:$16 sps:$4 sm:$0xff]  }
 0x7b8   : > { %3591 = vmatpush1.bf16.msra.mxu0 %v5290_v46  ;;  %v5378_v46 = vld [vmem:[%s6160_s14 + $0x268] ss:$16 sps:$4 sm:$0xff]  }
 0x7b9   : > { %3632 = vmatpush1.bf16.msra.mxu1 %v5293_v47  ;;  %3592 = vmatprep.subr.bf16.mxu0 %v5298_v48  ;;  %v5383_v47 = vld [vmem:[%s6160_s14 + $0x4c] ss:$16 sps:$4 sm:$0xff]  }
 0x7ba   : > { %3633 = vmatprep.subr.bf16.mxu1 %v5301_v49  ;;  %v5386_v48 = vld [vmem:[%s6160_s14 + $0x24c] ss:$16 sps:$4 sm:$0xff]   ;;  %v5381_v49 = vld [vmem:[%s6160_s14 + $0x48] ss:$16 sps:$4 sm:$0xff]  }
 0x7bc   : > { %3593 = vmatpush1.bf16.msra.mxu0 %v5296_v13  ;;  %v5384_v13 = vld [vmem:[%s6160_s14 + $0x248] ss:$16 sps:$4 sm:$0xff]  }
 0x7bd   : > { %3634 = vmatpush1.bf16.msra.mxu1 %v5299_v50  ;;  %3594 = vmatprep.subr.bf16.mxu0 %v5304_v52  ;;  %v5389_v50 = vld [vmem:[%s6160_s14 + $0x2c] ss:$16 sps:$4 sm:$0xff]  }
 0x7be   : > { %3635 = vmatprep.subr.bf16.mxu1 %v5307_v53  ;;  %v5392_v52 = vld [vmem:[%s6160_s14 + $0x22c] ss:$16 sps:$4 sm:$0xff]   ;;  %v5387_v53 = vld [vmem:[%s6160_s14 + $0x28] ss:$16 sps:$4 sm:$0xff]  }
 0x7c0   : > { %3595 = vmatpush2.bf16.msra.mxu0 %v5302_v54  ;;  %v5390_v54 = vld [vmem:[%s6160_s14 + $0x228] ss:$16 sps:$4 sm:$0xff]  }
 0x7c1   : > { %3636 = vmatpush2.bf16.msra.mxu1 %v5305_v16  ;;  %3596 = vmatprep.subr.bf16.mxu0 %v5310_v55  ;;  %v5395_v16 = vld [vmem:[%s6160_s14 + $0xc] ss:$16 sps:$4 sm:$0xff]  }
 0x7c2   : > { %3637 = vmatprep.subr.bf16.mxu1 %v5313_v56  ;;  %v5398_v55 = vld [vmem:[%s6160_s14 + $0x20c] ss:$16 sps:$4 sm:$0xff]   ;;  %v5393_v56 = vld [vmem:[%s6160_s14 + $0x8] ss:$16 sps:$4 sm:$0xff]  }
 0x7c4   : > { %3597 = vmatpush2.bf16.msra.mxu0 %v5308_v57  ;;  %v5396_v57 = vld [vmem:[%s6160_s14 + $0x208] ss:$16 sps:$4 sm:$0xff]  }
 0x7c5   : > { %3638 = vmatpush2.bf16.msra.mxu1 %v5311_v58  ;;  %3598 = vmatprep.subr.bf16.mxu0 %v5316_v59  ;;  %v5401_v58 = vld [vmem:[%s6160_s14 + $0x1ec] ss:$16 sps:$4 sm:$0xff]  }
 0x7c6   : > { %3639 = vmatprep.subr.bf16.mxu1 %v5319_v60  ;;  %v5404_v59 = vld [vmem:[%s6160_s14 + $0x3ec] ss:$16 sps:$4 sm:$0xff]   ;;  %v5399_v60 = vld [vmem:[%s6160_s14 + $0x1e8] ss:$16 sps:$4 sm:$0xff]  }
 0x7c8   : > { %3599 = vmatpush2.bf16.msra.mxu0 %v5314_v51  ;;  %v5402_v51 = vld [vmem:[%s6160_s14 + $0x3e8] ss:$16 sps:$4 sm:$0xff]  }
 0x7c9   : > { %3640 = vmatpush2.bf16.msra.mxu1 %v5317_v63  ;;  %3600 = vmatprep.subr.bf16.mxu0 %v5322_v0  ;;  %v5407_v63 = vld [vmem:[%s6160_s14 + $0x1cc] ss:$16 sps:$4 sm:$0xff]  }
 0x7ca   : > { %3641 = vmatprep.subr.bf16.mxu1 %v5325_v2  ;;  %v5410_v0 = vld [vmem:[%s6160_s14 + $0x3cc] ss:$16 sps:$4 sm:$0xff]   ;;  %v5405_v2 = vld [vmem:[%s6160_s14 + $0x1c8] ss:$16 sps:$4 sm:$0xff]  }
 0x7cc   : > { %3601 = vmatpush2.bf16.msra.mxu0 %v5320_v3  ;;  %v5408_v3 = vld [vmem:[%s6160_s14 + $0x3c8] ss:$16 sps:$4 sm:$0xff]  }
 0x7cd   : > { %3642 = vmatpush2.bf16.msra.mxu1 %v5323_v4  ;;  %3602 = vmatprep.subr.bf16.mxu0 %v5328_v5  ;;  %v5413_v4 = vld [vmem:[%s6160_s14 + $0x1ac] ss:$16 sps:$4 sm:$0xff]  }
 0x7ce   : > { %3643 = vmatprep.subr.bf16.mxu1 %v5331_v6  ;;  %v5416_v5 = vld [vmem:[%s6160_s14 + $0x3ac] ss:$16 sps:$4 sm:$0xff]   ;;  %v5411_v6 = vld [vmem:[%s6160_s14 + $0x1a8] ss:$16 sps:$4 sm:$0xff]  }
 0x7d0   : > { %3603 = vmatpush2.bf16.msra.mxu0 %v5326_v7  ;;  %v5414_v7 = vld [vmem:[%s6160_s14 + $0x3a8] ss:$16 sps:$4 sm:$0xff]  }
 0x7d1   : > { %3644 = vmatpush2.bf16.msra.mxu1 %v5329_v8  ;;  %3604 = vmatprep.subr.bf16.mxu0 %v5334_v9  ;;  %v5419_v8 = vld [vmem:[%s6160_s14 + $0x18c] ss:$16 sps:$4 sm:$0xff]  }
 0x7d2   : > { %3645 = vmatprep.subr.bf16.mxu1 %v5337_v14  ;;  %v5422_v9 = vld [vmem:[%s6160_s14 + $0x38c] ss:$16 sps:$4 sm:$0xff]   ;;  %v5417_v14 = vld [vmem:[%s6160_s14 + $0x188] ss:$16 sps:$4 sm:$0xff]  }
 0x7d4   : > { %3605 = vmatpush2.bf16.msra.mxu0 %v5332_v15  ;;  %v5420_v15 = vld [vmem:[%s6160_s14 + $0x388] ss:$16 sps:$4 sm:$0xff]  }
 0x7d5   : > { %3646 = vmatpush2.bf16.msra.mxu1 %v5335_v18  ;;  %3606 = vmatprep.subr.bf16.mxu0 %v5340_v19  ;;  %v5425_v18 = vld [vmem:[%s6160_s14 + $0x16c] ss:$16 sps:$4 sm:$0xff]  }
 0x7d6   : > { %3647 = vmatprep.subr.bf16.mxu1 %v5343_v20  ;;  %v5428_v19 = vld [vmem:[%s6160_s14 + $0x36c] ss:$16 sps:$4 sm:$0xff]   ;;  %v5423_v20 = vld [vmem:[%s6160_s14 + $0x168] ss:$16 sps:$4 sm:$0xff]  }
 0x7d8   : > { %3607 = vmatpush2.bf16.msra.mxu0 %v5338_v23  ;;  %v5426_v23 = vld [vmem:[%s6160_s14 + $0x368] ss:$16 sps:$4 sm:$0xff]  }
 0x7d9   : > { %3648 = vmatpush2.bf16.msra.mxu1 %v5341_v24  ;;  %3608 = vmatprep.subr.bf16.mxu0 %v5346_v25  ;;  %v5431_v24 = vld [vmem:[%s6160_s14 + $0x14c] ss:$16 sps:$4 sm:$0xff]  }
 0x7da   : > { %3649 = vmatprep.subr.bf16.mxu1 %v5349_v26  ;;  %v5434_v25 = vld [vmem:[%s6160_s14 + $0x34c] ss:$16 sps:$4 sm:$0xff]   ;;  %v5429_v26 = vld [vmem:[%s6160_s14 + $0x148] ss:$16 sps:$4 sm:$0xff]  }
 0x7dc   : > { %3609 = vmatpush2.bf16.msra.mxu0 %v5344_v28  ;;  %v5432_v28 = vld [vmem:[%s6160_s14 + $0x348] ss:$16 sps:$4 sm:$0xff]  }
 0x7dd   : > { %3650 = vmatpush2.bf16.msra.mxu1 %v5347_v29  ;;  %3660 = vmatprep.subr.bf16.mxu0 %v5353_v30  ;;  %v5437_v29 = vld [vmem:[%s6160_s14 + $0x12c] ss:$16 sps:$4 sm:$0xff]  }
 0x7de   : > { %3701 = vmatprep.subr.bf16.mxu1 %v5356_v31  ;;  %v5440_v30 = vld [vmem:[%s6160_s14 + $0x32c] ss:$16 sps:$4 sm:$0xff]   ;;  %v5435_v31 = vld [vmem:[%s6160_s14 + $0x128] ss:$16 sps:$4 sm:$0xff]  }
 0x7df   : > { %3611 = vmatmul.mubr.bf16.vlgmr.msra.gmra.mxu0 %v6346_v62 }
 0x7e0   : > { %3652 = vmatmul.mubr.bf16.vlgmr.msra.gmra.mxu1 %v6451_v32  ;;  %3661 = vmatpush1.bf16.msra.mxu0 %v5351_v33  ;;  %v5438_v33 = vld [vmem:[%s6160_s14 + $0x328] ss:$16 sps:$4 sm:$0xff]  }
 0x7e1   : > { %3702 = vmatpush1.bf16.msra.mxu1 %v5354_v34  ;;  %3662 = vmatprep.subr.bf16.mxu0 %v5359_v35  ;;  %v5443_v34 = vld [vmem:[%s6160_s14 + $0x10c] ss:$16 sps:$4 sm:$0xff]  }
 0x7e2   : > { %3703 = vmatprep.subr.bf16.mxu1 %v5362_v36  ;;  %3692 = vmatprep.mubr.bf16.mxu0 %v6344_v61  ;;  %v5372_v61 = vld [vmem:[%s6160_s14 + $0x288] ss:$16 sps:$4 sm:$0xff]   ;;  %v5446_v35 = vld [vmem:[%s6160_s14 + $0x30c] ss:$16 sps:$4 sm:$0xff]  }
 0x7e3   : > { %3733 = vmatprep.mubr.bf16.mxu1 %v6353_v1  ;;  %v5377_v1 = vld [vmem:[%s6160_s14 + $0x6c] ss:$16 sps:$4 sm:$0xff]   ;;  %v5441_v36 = vld [vmem:[%s6160_s14 + $0x108] ss:$16 sps:$4 sm:$0xff]  }
 0x7e4   : > { %3663 = vmatpush1.bf16.msra.mxu0 %v5357_v37  ;;  %v5444_v37 = vld [vmem:[%s6160_s14 + $0x308] ss:$16 sps:$4 sm:$0xff]  }
 0x7e5   : > { %3704 = vmatpush1.bf16.msra.mxu1 %v5360_v39  ;;  %3664 = vmatprep.subr.bf16.mxu0 %v5365_v40  ;;  %v5449_v39 = vld [vmem:[%s6160_s14 + $0x4ec] ss:$16 sps:$4 sm:$0xff]  }
 0x7e6   : > { %3705 = vmatprep.subr.bf16.mxu1 %v5368_v38  ;;  %v5452_v40 = vld [vmem:[%s6160_s14 + $0x6ec] ss:$16 sps:$4 sm:$0xff]   ;;  %v5447_v38 = vld [vmem:[%s6160_s14 + $0x4e8] ss:$16 sps:$4 sm:$0xff]  }
 0x7e8   : > { %3665 = vmatpush1.bf16.msra.mxu0 %v5363_v45  ;;  %v5450_v45 = vld [vmem:[%s6160_s14 + $0x6e8] ss:$16 sps:$4 sm:$0xff]  }
 0x7e9   : > { %3706 = vmatpush1.bf16.msra.mxu1 %v5366_v10  ;;  %3666 = vmatprep.subr.bf16.mxu0 %v5371_v41  ;;  %v5455_v10 = vld [vmem:[%s6160_s14 + $0x4cc] ss:$16 sps:$4 sm:$0xff]  }
 0x7ea   : > { %3707 = vmatprep.subr.bf16.mxu1 %v5374_v12  ;;  %v5458_v41 = vld [vmem:[%s6160_s14 + $0x6cc] ss:$16 sps:$4 sm:$0xff]   ;;  %v5453_v12 = vld [vmem:[%s6160_s14 + $0x4c8] ss:$16 sps:$4 sm:$0xff]  }
 0x7ec   : > { %3667 = vmatpush1.bf16.msra.mxu0 %v5369_v43  ;;  %v5456_v43 = vld [vmem:[%s6160_s14 + $0x6c8] ss:$16 sps:$4 sm:$0xff]  }
 0x7ed   : > { %3708 = vmatpush1.bf16.msra.mxu1 %v5372_v61  ;;  %3668 = vmatprep.subr.bf16.mxu0 %v5377_v1  ;;  %v5461_v61 = vld [vmem:[%s6160_s14 + $0x4ac] ss:$16 sps:$4 sm:$0xff]  }
 0x7ee   : > { %3709 = vmatprep.subr.bf16.mxu1 %v5380_v44  ;;  %v5464_v1 = vld [vmem:[%s6160_s14 + $0x6ac] ss:$16 sps:$4 sm:$0xff]  }
 0x7ef   : > { %v5467_v44 = vld [vmem:[%s6160_s14 + $0x48c] ss:$16 sps:$4 sm:$0xff]  }
 0x7f0   : > { %3669 = vmatpush1.bf16.msra.mxu0 %v5375_v11  ;;  %v5470_v11 = vld [vmem:[%s6160_s14 + $0x68c] ss:$16 sps:$4 sm:$0xff]  }
 0x7f1   : > { %3710 = vmatpush1.bf16.msra.mxu1 %v5378_v46  ;;  %3670 = vmatprep.subr.bf16.mxu0 %v5383_v47  ;;  %v5465_v46 = vld [vmem:[%s6160_s14 + $0x488] ss:$16 sps:$4 sm:$0xff]   ;;  %v5476_v47 = vld [vmem:[%s6160_s14 + $0x66c] ss:$16 sps:$4 sm:$0xff]  }
 0x7f2   : > { %3711 = vmatprep.subr.bf16.mxu1 %v5386_v48  ;;  %v5471_v48 = vld [vmem:[%s6160_s14 + $0x468] ss:$16 sps:$4 sm:$0xff]  }
 0x7f4   : > { %3671 = vmatpush1.bf16.msra.mxu0 %v5381_v49  ;;  %v5474_v49 = vld [vmem:[%s6160_s14 + $0x668] ss:$16 sps:$4 sm:$0xff]  }
 0x7f5   : > { %3712 = vmatpush1.bf16.msra.mxu1 %v5384_v13  ;;  %3672 = vmatprep.subr.bf16.mxu0 %v5389_v50  ;;  %v5479_v13 = vld [vmem:[%s6160_s14 + $0x44c] ss:$16 sps:$4 sm:$0xff]  }
 0x7f6   : > { %3713 = vmatprep.subr.bf16.mxu1 %v5392_v52  ;;  %v5482_v50 = vld [vmem:[%s6160_s14 + $0x64c] ss:$16 sps:$4 sm:$0xff]   ;;  %v5477_v52 = vld [vmem:[%s6160_s14 + $0x448] ss:$16 sps:$4 sm:$0xff]  }
 0x7f8   : > { %3673 = vmatpush1.bf16.msra.mxu0 %v5387_v53  ;;  %v5480_v53 = vld [vmem:[%s6160_s14 + $0x648] ss:$16 sps:$4 sm:$0xff]  }
 0x7f9   : > { %3714 = vmatpush1.bf16.msra.mxu1 %v5390_v54  ;;  %3674 = vmatprep.subr.bf16.mxu0 %v5395_v16  ;;  %v5485_v54 = vld [vmem:[%s6160_s14 + $0x42c] ss:$16 sps:$4 sm:$0xff]  }
 0x7fa   : > { %3715 = vmatprep.subr.bf16.mxu1 %v5398_v55  ;;  %v5488_v16 = vld [vmem:[%s6160_s14 + $0x62c] ss:$16 sps:$4 sm:$0xff]   ;;  %v5483_v55 = vld [vmem:[%s6160_s14 + $0x428] ss:$16 sps:$4 sm:$0xff]  }
 0x7fc   : > { %3675 = vmatpush1.bf16.msra.mxu0 %v5393_v56  ;;  %v5486_v56 = vld [vmem:[%s6160_s14 + $0x628] ss:$16 sps:$4 sm:$0xff]  }
 0x7fd   : > { %3716 = vmatpush1.bf16.msra.mxu1 %v5396_v57  ;;  %3676 = vmatprep.subr.bf16.mxu0 %v5401_v58  ;;  %v5491_v57 = vld [vmem:[%s6160_s14 + $0x40c] ss:$16 sps:$4 sm:$0xff]  }
 0x7fe   : > { %3717 = vmatprep.subr.bf16.mxu1 %v5404_v59  ;;  %v5494_v58 = vld [vmem:[%s6160_s14 + $0x60c] ss:$16 sps:$4 sm:$0xff]   ;;  %v5489_v59 = vld [vmem:[%s6160_s14 + $0x408] ss:$16 sps:$4 sm:$0xff]  }
 0x800   : > { %3677 = vmatpush2.bf16.msra.mxu0 %v5399_v60  ;;  %v5492_v60 = vld [vmem:[%s6160_s14 + $0x608] ss:$16 sps:$4 sm:$0xff]  }
 0x801   : > { %3718 = vmatpush2.bf16.msra.mxu1 %v5402_v51  ;;  %3678 = vmatprep.subr.bf16.mxu0 %v5407_v63  ;;  %v5497_v51 = vld [vmem:[%s6160_s14 + $0x5ec] ss:$16 sps:$4 sm:$0xff]  }
 0x802   : > { %3719 = vmatprep.subr.bf16.mxu1 %v5410_v0  ;;  %v5500_v63 = vld [vmem:[%s6160_s14 + $0x7ec] ss:$16 sps:$4 sm:$0xff]   ;;  %v5495_v0 = vld [vmem:[%s6160_s14 + $0x5e8] ss:$16 sps:$4 sm:$0xff]  }
 0x804   : > { %3679 = vmatpush2.bf16.msra.mxu0 %v5405_v2  ;;  %v5498_v2 = vld [vmem:[%s6160_s14 + $0x7e8] ss:$16 sps:$4 sm:$0xff]  }
 0x805   : > { %3720 = vmatpush2.bf16.msra.mxu1 %v5408_v3  ;;  %3680 = vmatprep.subr.bf16.mxu0 %v5413_v4  ;;  %v5503_v3 = vld [vmem:[%s6160_s14 + $0x5cc] ss:$16 sps:$4 sm:$0xff]  }
 0x806   : > { %3721 = vmatprep.subr.bf16.mxu1 %v5416_v5  ;;  %v5506_v4 = vld [vmem:[%s6160_s14 + $0x7cc] ss:$16 sps:$4 sm:$0xff]   ;;  %v5501_v5 = vld [vmem:[%s6160_s14 + $0x5c8] ss:$16 sps:$4 sm:$0xff]  }
 0x808   : > { %3681 = vmatpush2.bf16.msra.mxu0 %v5411_v6  ;;  %v5504_v6 = vld [vmem:[%s6160_s14 + $0x7c8] ss:$16 sps:$4 sm:$0xff]  }
 0x809   : > { %3722 = vmatpush2.bf16.msra.mxu1 %v5414_v7  ;;  %3682 = vmatprep.subr.bf16.mxu0 %v5419_v8  ;;  %v5509_v7 = vld [vmem:[%s6160_s14 + $0x5ac] ss:$16 sps:$4 sm:$0xff]  }
 0x80a   : > { %3723 = vmatprep.subr.bf16.mxu1 %v5422_v9  ;;  %v5512_v8 = vld [vmem:[%s6160_s14 + $0x7ac] ss:$16 sps:$4 sm:$0xff]   ;;  %v5507_v9 = vld [vmem:[%s6160_s14 + $0x5a8] ss:$16 sps:$4 sm:$0xff]  }
 0x80c   : > { %3683 = vmatpush2.bf16.msra.mxu0 %v5417_v14  ;;  %v5510_v14 = vld [vmem:[%s6160_s14 + $0x7a8] ss:$16 sps:$4 sm:$0xff]  }
 0x80d   : > { %3724 = vmatpush2.bf16.msra.mxu1 %v5420_v15  ;;  %3684 = vmatprep.subr.bf16.mxu0 %v5425_v18  ;;  %v5515_v15 = vld [vmem:[%s6160_s14 + $0x58c] ss:$16 sps:$4 sm:$0xff]  }
 0x80e   : > { %3725 = vmatprep.subr.bf16.mxu1 %v5428_v19  ;;  %v5518_v18 = vld [vmem:[%s6160_s14 + $0x78c] ss:$16 sps:$4 sm:$0xff]   ;;  %v5513_v19 = vld [vmem:[%s6160_s14 + $0x588] ss:$16 sps:$4 sm:$0xff]  }
 0x810   : > { %3685 = vmatpush2.bf16.msra.mxu0 %v5423_v20  ;;  %v5516_v20 = vld [vmem:[%s6160_s14 + $0x788] ss:$16 sps:$4 sm:$0xff]  }
 0x811   : > { %3726 = vmatpush2.bf16.msra.mxu1 %v5426_v23  ;;  %3686 = vmatprep.subr.bf16.mxu0 %v5431_v24  ;;  %v5521_v23 = vld [vmem:[%s6160_s14 + $0x56c] ss:$16 sps:$4 sm:$0xff]  }
 0x812   : > { %3727 = vmatprep.subr.bf16.mxu1 %v5434_v25  ;;  %v5524_v24 = vld [vmem:[%s6160_s14 + $0x76c] ss:$16 sps:$4 sm:$0xff]   ;;  %v5519_v25 = vld [vmem:[%s6160_s14 + $0x568] ss:$16 sps:$4 sm:$0xff]  }
 0x814   : > { %3687 = vmatpush2.bf16.msra.mxu0 %v5429_v26  ;;  %v5522_v26 = vld [vmem:[%s6160_s14 + $0x768] ss:$16 sps:$4 sm:$0xff]  }
 0x815   : > { %3728 = vmatpush2.bf16.msra.mxu1 %v5432_v28  ;;  %3688 = vmatprep.subr.bf16.mxu0 %v5437_v29  ;;  %v5527_v28 = vld [vmem:[%s6160_s14 + $0x54c] ss:$16 sps:$4 sm:$0xff]  }
 0x816   : > { %3729 = vmatprep.subr.bf16.mxu1 %v5440_v30  ;;  %v5530_v29 = vld [vmem:[%s6160_s14 + $0x74c] ss:$16 sps:$4 sm:$0xff]   ;;  %v5525_v30 = vld [vmem:[%s6160_s14 + $0x548] ss:$16 sps:$4 sm:$0xff]  }
 0x818   : > { %3689 = vmatpush2.bf16.msra.mxu0 %v5435_v31  ;;  %v5528_v31 = vld [vmem:[%s6160_s14 + $0x748] ss:$16 sps:$4 sm:$0xff]  }
 0x819   : > { %3730 = vmatpush2.bf16.msra.mxu1 %v5438_v33  ;;  %3690 = vmatprep.subr.bf16.mxu0 %v5443_v34  ;;  %v5533_v33 = vld [vmem:[%s6160_s14 + $0x52c] ss:$16 sps:$4 sm:$0xff]  }
 0x81a   : > { %3731 = vmatprep.subr.bf16.mxu1 %v5446_v35  ;;  %v5536_v34 = vld [vmem:[%s6160_s14 + $0x72c] ss:$16 sps:$4 sm:$0xff]   ;;  %v5531_v35 = vld [vmem:[%s6160_s14 + $0x528] ss:$16 sps:$4 sm:$0xff]  }
 0x81c   : > { %3691 = vmatpush2.bf16.msra.mxu0 %v5441_v36  ;;  %v5534_v36 = vld [vmem:[%s6160_s14 + $0x728] ss:$16 sps:$4 sm:$0xff]  }
 0x81d   : > { %3732 = vmatpush2.bf16.msra.mxu1 %v5444_v37  ;;  %3742 = vmatprep.subr.bf16.mxu0 %v5449_v39  ;;  %v5539_v37 = vld [vmem:[%s6160_s14 + $0x50c] ss:$16 sps:$4 sm:$0xff]  }
 0x81e   : > { %3783 = vmatprep.subr.bf16.mxu1 %v5452_v40  ;;  %v5542_v39 = vld [vmem:[%s6160_s14 + $0x70c] ss:$16 sps:$4 sm:$0xff]   ;;  %v5537_v40 = vld [vmem:[%s6160_s14 + $0x508] ss:$16 sps:$4 sm:$0xff]  }
 0x81f   : > { %3693 = vmatmul.mubr.bf16.vlgmr.msra.gmra.mxu0 %v6366_v17  ;;  %v5459_v17 = vld [vmem:[%s6160_s14 + $0x4a8] ss:$16 sps:$4 sm:$0xff]  }
 0x820   : > { %3734 = vmatmul.mubr.bf16.vlgmr.msra.gmra.mxu1 %v6375_v22  ;;  %3743 = vmatpush1.bf16.msra.mxu0 %v5447_v38  ;;  %v5462_v22 = vld [vmem:[%s6160_s14 + $0x6a8] ss:$16 sps:$4 sm:$0xff]  }
 0x821   : > { %3784 = vmatpush1.bf16.msra.mxu1 %v5450_v45  ;;  %3744 = vmatprep.subr.bf16.mxu0 %v5455_v10  ;;  %v5540_v38 = vld [vmem:[%s6160_s14 + $0x708] ss:$16 sps:$4 sm:$0xff]   ;;  %v2140_v45 = vsub.s32 0, %v6329_v42  ;;  %v2136_v10 = vld [vmem:[%s6167_s10] sm:$0xf] }
 0x822   : > { %3785 = vmatprep.subr.bf16.mxu1 %v5458_v41  ;;  %3774 = vmatprep.mubr.bf16.mxu0 %v6371_v21  ;;  %v5468_v21 = vld [vmem:[%s6160_s14 + $0x688] ss:$16 sps:$4 sm:$0xff]   ;;  %v2144_v41 = vsub.s32 1, %v6329_v42 }
 0x823   : > { %3815 = vmatprep.mubr.bf16.mxu1 %v6383_v27  ;;  %v5473_v27 = vld [vmem:[%s6160_s14 + $0x46c] ss:$16 sps:$4 sm:$0xff]  }
 0x824   : > { %3745 = vmatpush1.bf16.msra.mxu0 %v5453_v12  ;;  %v2141_v12 = vrot.slane %v2136_v10, %v2140_v45 }
 0x825   : > { %3786 = vmatpush1.bf16.msra.mxu1 %v5456_v43  ;;  %3746 = vmatprep.subr.bf16.mxu0 %v5461_v61  ;;  %v2145_v43 = vrot.slane %v2136_v10, %v2144_v41 }
 0x826   : > { %3787 = vmatprep.subr.bf16.mxu1 %v5464_v1 }
 0x828   : > { %3747 = vmatpush1.bf16.msra.mxu0 %v5459_v17 }
 0x829   : > { %3788 = vmatpush1.bf16.msra.mxu1 %v5462_v22  ;;  %3748 = vmatprep.subr.bf16.mxu0 %v5467_v44 }
 0x82a   : > { %3789 = vmatprep.subr.bf16.mxu1 %v5470_v11 }
 0x82c   : > { %3749 = vmatpush1.bf16.msra.mxu0 %v5465_v46 }
 0x82d   : > { %3790 = vmatpush1.bf16.msra.mxu1 %v5468_v21  ;;  %3750 = vmatprep.subr.bf16.mxu0 %v5473_v27 }
 0x82e   : > { %3791 = vmatprep.subr.bf16.mxu1 %v5476_v47 }
 0x830   : > { %3751 = vmatpush1.bf16.msra.mxu0 %v5471_v48 }
 0x831   : > { %3792 = vmatpush1.bf16.msra.mxu1 %v5474_v49  ;;  %3752 = vmatprep.subr.bf16.mxu0 %v5479_v13 }
 0x832   : > { %3793 = vmatprep.subr.bf16.mxu1 %v5482_v50 }
 0x834   : > { %3753 = vmatpush1.bf16.msra.mxu0 %v5477_v52 }
 0x835   : > { %3794 = vmatpush1.bf16.msra.mxu1 %v5480_v53  ;;  %3754 = vmatprep.subr.bf16.mxu0 %v5485_v54 }
 0x836   : > { %3795 = vmatprep.subr.bf16.mxu1 %v5488_v16 }
 0x838   : > { %3755 = vmatpush1.bf16.msra.mxu0 %v5483_v55 }
 0x839   : > { %3796 = vmatpush1.bf16.msra.mxu1 %v5486_v56  ;;  %3756 = vmatprep.subr.bf16.mxu0 %v5491_v57 }
 0x83a   : > { %3797 = vmatprep.subr.bf16.mxu1 %v5494_v58 }
 0x83c   : > { %3757 = vmatpush1.bf16.msra.mxu0 %v5489_v59 }
 0x83d   : > { %3798 = vmatpush1.bf16.msra.mxu1 %v5492_v60  ;;  %3758 = vmatprep.subr.bf16.mxu0 %v5497_v51 }
 0x83e   : > { %3799 = vmatprep.subr.bf16.mxu1 %v5500_v63 }
 0x840   : > { %3759 = vmatpush2.bf16.msra.mxu0 %v5495_v0 }
 0x841   : > { %3800 = vmatpush2.bf16.msra.mxu1 %v5498_v2  ;;  %3760 = vmatprep.subr.bf16.mxu0 %v5503_v3 }
 0x842   : > { %3801 = vmatprep.subr.bf16.mxu1 %v5506_v4 }
 0x844   : > { %3761 = vmatpush2.bf16.msra.mxu0 %v5501_v5 }
 0x845   : > { %3802 = vmatpush2.bf16.msra.mxu1 %v5504_v6  ;;  %3762 = vmatprep.subr.bf16.mxu0 %v5509_v7  ;;  %v2148_v6 = vsub.s32 2, %v6329_v42  ;;  %v2152_v7 = vsub.s32 3, %v6329_v42 }
 0x846   : > { %3803 = vmatprep.subr.bf16.mxu1 %v5512_v8 }
 0x847   : > { %v2149_v8 = vrot.slane %v2136_v10, %v2148_v6 }
 0x848   : > { %3763 = vmatpush2.bf16.msra.mxu0 %v5507_v9  ;;  %v2153_v9 = vrot.slane %v2136_v10, %v2152_v7 }
 0x849   : > { %3804 = vmatpush2.bf16.msra.mxu1 %v5510_v14  ;;  %3764 = vmatprep.subr.bf16.mxu0 %v5515_v15 }
 0x84a   : > { %3805 = vmatprep.subr.bf16.mxu1 %v5518_v18  ;;  %v5882_v18 = vmov 1983009808  }
 0x84c   : > { %3765 = vmatpush2.bf16.msra.mxu0 %v5513_v19  ;;  %v3831_v19 = vunpack.c.l.s4 %v5882_v18 }
 0x84d   : > { %3806 = vmatpush2.bf16.msra.mxu1 %v5516_v20  ;;  %3766 = vmatprep.subr.bf16.mxu0 %v5521_v23  ;;  %v3847_v20 = vld [vmem:[%s6178_s6] sm:$0xff] }
 0x84e   : > { %3807 = vmatprep.subr.bf16.mxu1 %v5524_v24 }
 0x850   : > { %3767 = vmatpush2.bf16.msra.mxu0 %v5519_v25 }
 0x851   : > { %3808 = vmatpush2.bf16.msra.mxu1 %v5522_v26  ;;  %3768 = vmatprep.subr.bf16.mxu0 %v5527_v28  ;;  %v3832_v28 = vunpack.c.0.s8 %v3831_v19 }
 0x852   : > { %3809 = vmatprep.subr.bf16.mxu1 %v5530_v29 }
 0x854   : > { %3769 = vmatpush2.bf16.msra.mxu0 %v5525_v30 }
 0x855   : > { %3810 = vmatpush2.bf16.msra.mxu1 %v5528_v31  ;;  %3770 = vmatprep.subr.bf16.mxu0 %v5533_v33 }
 0x856   : > { %3811 = vmatprep.subr.bf16.mxu1 %v5536_v34 }
 0x858   : > { %3771 = vmatpush2.bf16.msra.mxu0 %v5531_v35 }
 0x859   : > { %3812 = vmatpush2.bf16.msra.mxu1 %v5534_v36  ;;  %3772 = vmatprep.subr.bf16.mxu0 %v5539_v37 }
 0x85a   : > { %3813 = vmatprep.subr.bf16.mxu1 %v5542_v39 }
 0x85c   : > { %3773 = vmatpush2.bf16.msra.mxu0 %v5537_v40  ;;  %v3835_v40 = vsub.s32 %v3832_v28, %v6329_v42 }
 0x85d   : > { %3814 = vmatpush2.bf16.msra.mxu1 %v5540_v38 }
 0x85f   : > { %v3530_v61 = vpop.f32.mrf.mxu0  ;;  %3775 = vmatmul.mubr.bf16.vlgmr.msra.gmra.mxu0 %v6346_v62 }
 0x860   : > { %v3571_v1 = vpop.f32.mrf.mxu1  ;;  %3816 = vmatmul.mubr.bf16.vlgmr.msra.gmra.mxu1 %v6451_v32  ;;  %v3531_v17 = vadd.f32 %v3530_v61, %v2141_v12  ;;  %v3848_v61 = vld [vmem:[%s6178_s6 + $0x8] sm:$0xff] }
 0x861   : > { %v3532_v22 = vpop.f32.mrf.mxu0 }
 0x862   : > { %v3573_v44 = vpop.f32.mrf.mxu1  ;;  %v3572_v11 = vadd.f32 %v3571_v1, %v3531_v17  ;;  %v3533_v46 = vadd.f32 %v3532_v22, %v2145_v43 }
 0x863   : > { %v3534_v21 = vpop.f32.mrf.mxu0 }
 0x864   : > { %v3575_v27 = vpop.f32.mrf.mxu1  ;;  %v3574_v47 = vadd.f32 %v3573_v44, %v3533_v46 }
 0x865   : > { %v3535_v48 = vpop.f32.mrf.mxu0 }
 0x866   : > { %v3576_v49 = vpop.f32.mrf.mxu1 }
 0x89f   : > { %v3612_v13 = vpop.f32.mrf.mxu0 }
 0x8a0   : > { %v3653_v50 = vpop.f32.mrf.mxu1  ;;  %v3613_v52 = vadd.f32 %v3612_v13, %v3572_v11 }
 0x8a1   : > { %v3614_v53 = vpop.f32.mrf.mxu0 }
 0x8a2   : > { %v3655_v54 = vpop.f32.mrf.mxu1  ;;  %v3654_v16 = vadd.f32 %v3653_v50, %v3613_v52  ;;  %v3615_v55 = vadd.f32 %v3614_v53, %v3574_v47 }
 0x8a3   : > { %v3616_v62 = vpop.f32.mrf.mxu0 }
 0x8a4   : > { %v3657_v56 = vpop.f32.mrf.mxu1  ;;  %v3656_v32 = vadd.f32 %v3655_v54, %v3615_v55 }
 0x8a5   : > { %v3617_v57 = vpop.f32.mrf.mxu0 }
 0x8a6   : > { %v3658_v58 = vpop.f32.mrf.mxu1  ;;  %v3828_v59 = vcombine.low %v3654_v16, %v3656_v32 }
 0x8a8   : > { %v3877_v14 = vrot.slane %v3828_v59, 6  ;;  %v3851_v26 = vmul.f32 %v3847_v20, %v3828_v59  ;;  %v3836_v44 = vrot.slane %v3828_v59, %v3835_v40 }
 0x8aa   : > { %v3881_v24 = vmul.f32 %v3877_v14, %v3847_v20  ;;  %v3855_v39 = vcombine.high %v3851_v26, %v3851_v26  ;;  %v3860_v11 = vsel %vm3859_vm0, %v3851_v26, 0.0  ;;  %v3912_v20 = vld [vmem:[#allocation17] sm:$0x1] }
 0x8ac   : > { %v3885_v36 = vcombine.high %v3881_v24, %v3881_v24  ;;  %v3861_v22 = vsel %vm3859_vm0, %v3855_v39, 0.0  ;;  %v3887_v42 = vrot.slane %v3881_v24, 2 }
 0x8ad   : > { %v3862_v47 = vadd.f32 %v3861_v22, %v3860_v11 }
 0x8ae   : > { %v3888_v1 = vrot.slane %v3885_v36, 2  ;;  %v3895_v62 = vsel %vm3859_vm0, %v3887_v42, 0.0 }
 0x8b0   : > { %v3896_v48 = vsel %vm3859_vm0, %v3888_v1, 0.0 }
 0x8b1   : > { %v3897_v32 = vadd.f32 %v3896_v48, %v3895_v62 }
 0x8df   : > { %v3694_v60 = vpop.f32.mrf.mxu0 }
 0x8e0   : > { %v3735_v51 = vpop.f32.mrf.mxu1  ;;  %v3695_v15 = vadd.f32 %v3694_v60, %v2149_v8 }
 0x8e1   : > { %v3696_v63 = vpop.f32.mrf.mxu0 }
 0x8e2   : > { %v3737_v0 = vpop.f32.mrf.mxu1  ;;  %v3697_v23 = vadd.f32 %v3696_v63, %v2153_v9  ;;  %v3736_v25 = vadd.f32 %v3735_v51, %v3695_v15 }
 0x8e3   : > { %v3698_v2 = vpop.f32.mrf.mxu0 }
 0x8e4   : > { %v3739_v3 = vpop.f32.mrf.mxu1  ;;  %v3738_v31 = vadd.f32 %v3737_v0, %v3697_v23 }
 0x8e5   : > { %v3699_v4 = vpop.f32.mrf.mxu0 }
 0x8e6   : > { %v3740_v5 = vpop.f32.mrf.mxu1 }
 0x91f   : > { %v3776_v29 = vpop.f32.mrf.mxu0 }
 0x920   : > { %v3817_v30 = vpop.f32.mrf.mxu1  ;;  %v3777_v33 = vadd.f32 %v3776_v29, %v3736_v25 }
 0x921   : > { %v3778_v34 = vpop.f32.mrf.mxu0 }
 0x922   : > { %v3819_v35 = vpop.f32.mrf.mxu1  ;;  %v3779_v37 = vadd.f32 %v3778_v34, %v3738_v31  ;;  %v3818_v10 = vadd.f32 %v3817_v30, %v3777_v33 }
 0x923   : > { %v3780_v38 = vpop.f32.mrf.mxu0 }
 0x924   : > { %v3821_v45 = vpop.f32.mrf.mxu1  ;;  %v3820_v41 = vadd.f32 %v3819_v35, %v3779_v37 }
 0x925   : > { %v3781_v12 = vpop.f32.mrf.mxu0 }
 0x926   : > { %v3822_v43 = vpop.f32.mrf.mxu1  ;;  %v3829_v17 = vcombine.low %v3818_v10, %v3820_v41 }
 0x928   : > { %v3843_v46 = vrot.slane %v3829_v17, %v3835_v40  ;;  %v3878_v21 = vrot.slane %v3829_v17, 6  ;;  %v3852_v27 = vmul.f32 %v3848_v61, %v3829_v17 }
 0x92a   : > { %v3844_v49 = vcombine.low %v3836_v44, %v3843_v46  ;;  %v3856_v13 = vcombine.high %v3852_v27, %v3852_v27  ;;  %v3863_v50 = vsel %vm3859_vm0, %v3852_v27, 0.0  ;;  %v3882_v52 = vmul.f32 %v3878_v21, %v3848_v61 }
 0x92b   : > { %v3864_v53 = vadd.f32 %v3863_v50, %v3862_v47 }
 0x92c   : > { %3846 = vst [vmem:[%s6180_s26] sm:$0xff] %v3844_v49  ;;  %v3865_v54 = vsel %vm3859_vm0, %v3856_v13, 0.0  ;;  %v3886_v16 = vcombine.high %v3882_v52, %v3882_v52  ;;  %v3889_v55 = vrot.slane %v3882_v52, 2 }
 0x92d   : > { %v3866_v56 = vadd.f32 %v3865_v54, %v3864_v53 }
 0x92e   : > { %v3890_v57 = vrot.slane %v3886_v16, 2  ;;  %v3898_v58 = vsel %vm3859_vm0, %v3889_v55, 0.0 }
 0x92f   : > { %3867 = vadd.xlane.f32.xlu0 %v3866_v56  ;;  %v3899_v59 = vadd.f32 %v3898_v58, %v3897_v32 }
 0x930   : > { %v3900_v60 = vsel %vm3859_vm0, %v3890_v57, 0.0 }
 0x931   : > { %v3901_v51 = vadd.f32 %v3900_v60, %v3899_v59 }
 0x933   : > { %3902 = vadd.xlane.f32.xlu0 %v3901_v51 }
 0x9b8   : > { %v3868_v63 = vpop.xlane.xlu0 %3867 }
 0x9b9   : > { %v3869_v0 = vrot.slane %v3868_v63, 4 }
 0x9bb   : > { %v3870_v2 = vadd.f32 %v3869_v0, %v3868_v63 }
 0x9bc   : > { %v3903_v3 = vpop.xlane.xlu0 %3902 }
 0x9bd   : > { %v3871_v4 = vrot.slane %v3870_v2, 2  ;;  %v3904_v5 = vrot.slane %v3903_v3, 4 }
 0x9bf   : > { %v3905_v6 = vadd.f32 %v3904_v5, %v3903_v3  ;;  %v3872_v7 = vadd.f32 %v3871_v4, %v3870_v2 }
 0x9c1   : > { %v3906_v8 = vrot.slane %v3905_v6, 2  ;;  %v3873_v9 = vrot.slane %v3872_v7, 1 }
 0x9c3   : > { %v3907_v14 = vadd.f32 %v3906_v8, %v3905_v6  ;;  %v3874_v15 = vadd.f32 %v3873_v9, %v3872_v7 }
 0x9c5   : > { %5013 = vpush %v3874_v15  ;;  %v3908_v18 = vrot.slane %v3907_v14, 1 }
 0x9c7   : > { %v3909_v19 = vadd.f32 %v3908_v18, %v3907_v14 }
 0x9c9   : > { %5015 = vpush %v3909_v19 }
 0x9f6   : > { %s5014_s14 = spop %5013 }
 0x9f7   : > { %v3876_v23 = vstv %s5014_s14 }
 0x9fa   : > { %s5016_s10 = spop %5015 }
 0x9fb   : > { %v3911_v24 = vstv %s5016_s10  ;;  %3921 = sbr.rel (%p4430_p11) target bundleno = 2570 (0xa0a), region = 100 }
 0x9fc   : > { %v3914_v25 = vsel %vm3913_vm1, %v3876_v23, %v3911_v24 }
 0x9fd   : > { %v3915_v26 = vadd.f32 %v3914_v25, %v3912_v20 }
 0x9ff   : > { %3917 = vst.msk [vmem:[#allocation17] sm:$0x1] %vm3916_vm2, %v3915_v26 }
 0xa00   : > { %v3923_v29 = vld [vmem:[#allocation15] sm:$0x1] }
 0xa06   : > { %v3922_v28 = vld [vmem:[#allocation17] sm:$0x1] }
 0xa07   : > { %v3924_v30 = vadd.f32 %v3923_v29, %v3922_v28 }
 0xa09   : > { %3925 = vst.msk [vmem:[#allocation17] sm:$0x1] %vm3916_vm2, %v3924_v30 }
 0xa0a PF: > { %s5883_s21 = smov [#allocation17]   ;;  %s4440_s29 = sshll.u32 %s5971_s27, 7 }
 0xa0b   : > { %s3938_s13 = sshll.u32 %s5883_s21, 4  ;;  %s6611_s6 = scalar_lea.hbm %s6672_s12, %s4440_s29  ;;  %s3939_s13 = int_to_ptr.vmem [resolvable:$true] %s3938_s13 }
 0xa0c   : > { %s5755_s15 = scalar_lea.vmem %s3939_s13, 16  ;;  %p6724_p5 = scmp.eq.s32.totalorder %s5971_s27, 1 }
 0xa0d   : > { %p5756_p9 = scmp.ne.s32.totalorder %s3939_s13, %s5755_s15  ;;  %s5761_s19 = scalar_lea.vmem %s3939_s13, 32 }
 0xa0e   : > { %p5762_p13 = scmp.lt.s32.totalorder %s3939_s13, %s3939_s13  ;;  %p5763_p6 = scmp.lt.s32.totalorder %s5761_s19, %s5755_s15 }
 0xa0f   : > { %p5757_p10 = pnand %p5756_p9, %p6724_p5 }
 0xa10   : > { %p5764_p4 = por %p5763_p6, %p5762_p13 }
 0xa11   : > { %p5758_p0 = pneg %p5757_p10 }
 0xa13   : > { %p5765_p3 = pnand %p5764_p4, %p5758_p0 }
 0xa15   : > { %5768 = shalt.err (!%p5765_p3)
}
 0xa16   : > { %p6725_p2 = pmov %p6724_p5  ;;  %s6726_s28 = sld [smem:[#allocation35_spill]] }
 0xa17   : > { %s6727_s18 = sld [smem:[#allocation30_spill]]  ;;  %s3955_s16 = sshll.u32 %s6180_s26, 4  ;;  %s3956_s16 = int_to_ptr.vmem [resolvable:$true] %s3955_s16 }
 0xa18   : > { %s3927_s4 = scalar_lea.sflag [#allocation19], %s6157_s17  ;;  %s5779_s14 = scalar_lea.vmem %s3956_s16, 128 }
 0xa19   : > { %p5780_p7 = scmp.ne.s32.totalorder %s3956_s16, %s5779_s14  ;;  %s5884_s10 = smov [#allocation18]  }
 0xa1a   : > { %s5783_s21 = sshll.u32 %s5884_s10, 4  ;;  %s5784_s21 = int_to_ptr.vmem [resolvable:$false] %s5783_s21 }
 0xa1b   : > { %s5785_s29 = scalar_lea.vmem %s5784_s21, 256  ;;  %p5786_p11 = scmp.lt.s32.totalorder %s3956_s16, %s5784_s21 }
 0xa1c   : > { %5046 = dma.vmem_to_hbm [thread:$0]  (%p6725_p2), %s3939_s13, 16, %s6726_s28, [#allocation5]  }
 0xa1d   : > { %p6728_p12 = scmp.ne.s32.totalorder %s6727_s18, 0  ;;  %p5787_p9 = scmp.lt.s32.totalorder %s5785_s29, %s5779_s14 }
 0xa1f   : > { %p5781_p1 = pnand %p5780_p7, %p6728_p12  ;;  %p5788_p5 = por %p5787_p9, %p5786_p11 }
 0xa21   : > { %p5782_p8 = pneg %p5781_p1 }
 0xa23   : > { %p5789_p10 = pnand %p5788_p5, %p5782_p8 }
 0xa25   : > { %5792 = shalt.err (!%p5789_p10)
}
 0xa26   : > { %s5793_s26 = scalar_lea.hbm %s6611_s6, 128  ;;  %s5797_s20 = scalar_lea.hbm %s6672_s12, 256 }
 0xa27   : > { %p5794_p0 = scmp.ne.s32.totalorder %s6611_s6, %s5793_s26  ;;  %p5798_p4 = scmp.lt.s32.totalorder %s6611_s6, %s6672_s12 }
 0xa28   : > { %p5799_p3 = scmp.lt.s32.totalorder %s5797_s20, %s5793_s26 }
 0xa29   : > { %p5795_p13 = pnand %p5794_p0, %p6728_p12 }
 0xa2a   : > { %p5800_p2 = por %p5799_p3, %p5798_p4 }
 0xa2b   : > { %p5796_p6 = pneg %p5795_p13 }
 0xa2d   : > { %p5801_p7 = pnand %p5800_p2, %p5796_p6 }
 0xa2f   : > { %5804 = shalt.err (!%p5801_p7)
}
 0xa30   : > { %5047 = dma.vmem_to_hbm [thread:$0]  (%p6728_p12), %s3956_s16, 128, %s6611_s6, %s3927_s4  }
 0xa31   : > { %p6729_p1 = scmp.eq.s32.totalorder %s5971_s27, 1 }
 0xa33   : > { %5842 = dma.done.wait (%p6729_p1), [#allocation5], 16   ;;  %p6730_p8 = pmov %p6729_p1 }
 0xa35   : > { %5844 = vsyncadd (%p6730_p8), [#allocation5], 4294967280 }
 0xa36 PF: > { %s6731_s19 = sld [smem:[#allocation27_spill]]  ;;  %p6734_p9 = scmp.ge.s32.totalorder %s5863_s24, 2 }
 0xa37   : > { %s6732_s25 = sld [smem:[#allocation31_spill]] }
 0xa3c   : > { %s3974_s2 = sand.u32 1, %s6731_s19  }
 0xa3d   : > { %p6733_p11 = scmp.ne.s32.totalorder %s6732_s25, 0  ;;  %s3975_s28 = scalar_lea.sflag [#allocation19], %s3974_s2 }
 0xa3f   : > { %p5078_p5 = pnand %p6734_p9, %p6733_p11 }
 0xa41   : > { %p5079_p10 = pneg %p5078_p5 }
 0xa43   : > { %5846 = dma.done.wait (%p5079_p10), %s3975_s28, 128  }
 0xa44   : > { %5848 = vsyncadd (%p5079_p10), %s3975_s28, 4294967168  ;;  %s6735_s24 = sld [smem:[#allocation28_spill]]  ;;  %s6737_s21 = smov %s5855_s22 }
 0xa45   : > { %s6736_s6 = sld [smem:[#allocation29_spill]]  ;;  %s6738_s22 = smov %s5859_s23 }
 0xa4a   : > { %p31_p12 = scmp.ge.s32.totalorder %s6735_s24, 4  }
 0xa4b   : > { %s6739_s23 = smov %s6736_s6 }
 0xa4c   :  { %33 = sbr.rel (!%p31_p12) target bundleno = 15 (0xf), region = 169 }
 0xa51   :  { %3980 = vsyncpa [#allocation4], 1 }
 0xa52   :  { %3982 = vsyncpa [#allocation4 + $0x1], 1 }
 0xa53   :  { %3983 = vsyncpa [#allocation7], 1 }
 0xa54   :  { %3984 = vsyncpa [#allocation10], 1 }
 0xa55   :  { %3985 = vsyncpa [#allocation13], 1 }
 0xa56   :  { %3987 = vsyncpa [#allocation13 + $0x1], 1 }
 0xa57   :  { %3988 = vsyncpa [#allocation16], 1 }
 0xa58   :  { %3989 = vsyncpa [#allocation5], 1 }
 0xa59   :  { %3991 = vsyncpa [#allocation5 + $0x1], 1 }
 0xa5a   :  { %3992 = vsyncpa [#allocation19], 1 }
 0xa5b   :  { %3994 = vsyncpa [#allocation19 + $0x1], 1 }

</bundles_post_ra>
